<compile_context>
chip_gen: v7x
topology: tpu7x:2x2x1
jax: 0.10.0
libtpu: 0.0.40
codegen_flags: <defaults>
</compile_context>

<pallas_src>
import jax
import jax.numpy as jnp
from jax.experimental import pallas as pl
from jax.experimental.pallas import tpu as pltpu

CIN = 32
COUT = 64
KH = KW = 2            # conv kernel taps
DIL = 2                # dilation
PAD = 1                # conv padding
NTAPS = KH * KW        # 4
# Tap (ki, kj) reads padded-input offset (DIL*ki, DIL*kj); order matches the
# (kh, kw)-major weight reshape in the wrapper.
_TAP_OFFSETS = tuple((DIL * ki, DIL * kj) for ki in range(KH) for kj in range(KW))


def _make_conv_pool_kernel(b_tile, H, W):
    """Kernel closed over the static tile/spatial sizes.

    Refs:
      x_ref : (b_tile, H+2, W+2, CIN)   bf16  padded NHWC input tile
      w_ref : (NTAPS, CIN, COUT)        bf16  per-tap weight matrices
      b_ref : (1, COUT)                 f32   conv bias
      o_ref : (b_tile, H-1, (W-1)*COUT) f32   pooled output (lane-dense slab)
    """
    M = b_tile * H * W
    Ho, Wo = H - 1, W - 1

    def kernel(x_ref, w_ref, b_ref, o_ref):
        x = x_ref[...]                                           # bf16 input tile
        # ---- conv via in-VMEM tap gather: 4 MXU matmuls, f32 accumulation ----
        acc = None
        for t, (hi, wj) in enumerate(_TAP_OFFSETS):
            tap = x[:, hi:hi + H, wj:wj + W, :]                  # (b, H, W, CIN)
            tap2d = tap.reshape(M, CIN)                          # rows = (b, i, j)
            part = jnp.dot(tap2d, w_ref[t],
                           preferred_element_type=jnp.float32)   # (M, COUT) f32
            acc = part if acc is None else acc + part
        conv = acc + b_ref[...]                                  # f32 epilogue

        # ---- MaxPool2d(kernel_size=2, stride=1): max of 4 shifted views ----
        c = conv.reshape(b_tile, H, W, COUT)
        pooled = jnp.maximum(
            jnp.maximum(c[:, :Ho, :Wo, :], c[:, :Ho, 1:, :]),
            jnp.maximum(c[:, 1:, :Wo, :], c[:, 1:, 1:, :]))      # (b, Ho, Wo, COUT)

        # ---- lane-dense store: merge (Wo, COUT) into one Wo*COUT lane slab ----
        merged = jnp.concatenate(
            [pooled[:, :, j, :] for j in range(Wo)], axis=-1)    # (b, Ho, Wo*COUT)
        o_ref[...] = merged.astype(o_ref.dtype)

    return kernel


def _pick_batch_tile(n, hw, target_rows=256, max_rows=2048):
    """Divisor of n giving matmul M-dim (b*hw) in [target, max] when possible,
    preferring >= 2 grid steps so both v7x TensorCores get work."""
    divs = [d for d in range(1, n + 1) if n % d == 0 and d * hw <= max_rows]
    if not divs:
        return 1
    big = [d for d in divs if d * hw >= target_rows]
    if big:
        multi = [d for d in big if n // d >= 2]
        return min(multi) if multi else min(big)
    multi = [d for d in divs if n // d >= 2]
    return max(multi) if multi else max(divs)


def conv2_forward(x_nchw, weight_oihw, bias):
    """Forward pass of Conv2: (N, 32, H, W) f32 -> (N, 64, H-1, W-1) f32."""
    N, C, H, W = x_nchw.shape
    assert C == CIN
    Ho, Wo = H - 1, W - 1

    # Wrapper-side prep is one pad/transpose pass (no 4x im2col blow-up in HBM);
    # matmul operands are bf16, accumulation stays f32.
    x_nhwc = jnp.transpose(x_nchw, (0, 2, 3, 1)).astype(jnp.float32)
    x_pad = jnp.pad(x_nhwc, ((0, 0), (PAD, PAD), (PAD, PAD), (0, 0)))
    x_pad = x_pad.astype(jnp.bfloat16)                       # (N, H+2, W+2, CIN)

    # (Cout, Cin, kh, kw) -> (kh*kw, Cin, Cout), tap-major (matches _TAP_OFFSETS).
    w_taps = jnp.transpose(weight_oihw, (2, 3, 1, 0)).reshape(NTAPS, CIN, COUT)
    w_taps = w_taps.astype(jnp.bfloat16)
    b_row = bias.reshape(1, COUT).astype(jnp.float32)

    b_tile = _pick_batch_tile(N, H * W)
    # TODO(synk): for very large H*W add a spatial row-tile with a +1-row halo so
    # per-step blocks stay under v7x's 64 MiB VMEM.

    out_flat = pl.pallas_call(
        _make_conv_pool_kernel(b_tile, H, W),
        out_shape=jax.ShapeDtypeStruct((N, Ho, Wo * COUT), jnp.float32),
        grid_spec=pltpu.PrefetchScalarGridSpec(
            num_scalar_prefetch=0,
            grid=(N // b_tile,),
            in_specs=[
                pl.BlockSpec((b_tile, H + 2 * PAD, W + 2 * PAD, CIN),
                             lambda t: (t, 0, 0, 0)),
                pl.BlockSpec((NTAPS, CIN, COUT), lambda t: (0, 0, 0)),
                pl.BlockSpec((1, COUT), lambda t: (0, 0)),
            ],
            out_specs=pl.BlockSpec((b_tile, Ho, Wo * COUT), lambda t: (t, 0, 0)),
        ),
        compiler_params=pltpu.CompilerParams(
            dimension_semantics=("parallel",),
            vmem_limit_bytes=48 * 1024 * 1024,
        ),
    )(x_pad, w_taps, b_row)

    out_nhwc = out_flat.reshape(N, Ho, Wo, COUT)
    return jnp.transpose(out_nhwc, (0, 3, 1, 2))              # back to NCHW


def _reference(x_nchw, weight_oihw, bias):
    """Independent pure-JAX f32 reference (lax conv + shifted-view max pool)."""
    conv = jax.lax.conv_general_dilated(
        x_nchw, weight_oihw,
        window_strides=(1, 1),
        padding=((PAD, PAD), (PAD, PAD)),
        rhs_dilation=(DIL, DIL),
        dimension_numbers=('NCHW', 'OIHW', 'NCHW'))
    conv = conv + bias[None, :, None, None]
    pooled = jnp.max(
        jnp.stack([conv[:, :, :-1, :-1], conv[:, :, :-1, 1:],
                   conv[:, :, 1:, :-1],  conv[:, :, 1:, 1:]]), axis=0)
    return pooled


if __name__ == "__main__":
    key = jax.random.PRNGKey(0)
    kx, kw, kb = jax.random.split(key, 3)

    # Small shapes consistent with the module: (N, 32, H, W).
    N, H, W = 8, 8, 8
    x = jax.random.normal(kx, (N, CIN, H, W), dtype=jnp.float32)

    # Deterministic parameter init (PyTorch-style uniform bounds).
    fan_in = CIN * KH * KW
    bound = 1.0 / (fan_in ** 0.5)
    weight = jax.random.uniform(kw, (COUT, CIN, KH, KW),
                                minval=-bound, maxval=bound, dtype=jnp.float32)
    bias = jax.random.uniform(kb, (COUT,), minval=-bound, maxval=bound,
                              dtype=jnp.float32)

    out = jax.jit(conv2_forward)(x, weight, bias)
    out = jax.block_until_ready(out)

    ref = _reference(x, weight, bias)
    assert out.shape == (N, COUT, H - 1, W - 1), out.shape
    max_err = float(jnp.max(jnp.abs(out - ref)))
    # bf16 matmul operands with f32 accumulation -> loosened tolerance.
    assert jnp.allclose(out, ref, rtol=5e-2, atol=5e-2), max_err

    print("KERNEL_OK")
</pallas_src>

<mosaic_0001>
module attributes {stable_mosaic.version = 11 : i64} {
  func.func @kernel(%arg0: i32, %arg1: memref<4x10x10x32xbf16, #tpu.memory_space<vmem>>, %arg2: memref<4x32x64xbf16, #tpu.memory_space<vmem>>, %arg3: memref<1x64xf32, #tpu.memory_space<vmem>>, %arg4: memref<4x7x448xf32, #tpu.memory_space<vmem>>) attributes {dimension_semantics = [#tpu.dimension_semantics<parallel>], iteration_bounds = array<i64: 2>, scalar_prefetch = 0 : i64, scratch_operands = 0 : i64, tpu.core_type = #tpu.core_type<tc>, window_params = [{transform_indices = @transform_0, window_bounds = array<i64: 4, 10, 10, 32>}, {pipeline_mode = #tpu.pipeline_mode<synchronous>, transform_indices = @transform_1, window_bounds = array<i64: 4, 32, 64>}, {pipeline_mode = #tpu.pipeline_mode<synchronous>, transform_indices = @transform_2, window_bounds = array<i64: 1, 64>}, {transform_indices = @transform_3, window_bounds = array<i64: 4, 7, 448>}]} {
    %c0 = arith.constant 0 : index
    %c0_0 = arith.constant 0 : index
    %c0_1 = arith.constant 0 : index
    %c0_2 = arith.constant 0 : index
    %0 = vector.load %arg1[%c0, %c0_0, %c0_1, %c0_2] : memref<4x10x10x32xbf16, #tpu.memory_space<vmem>>, vector<4x10x10x32xbf16>
    %1 = vector.extract_strided_slice %0 {offsets = [0, 0, 0, 0], sizes = [4, 8, 8, 32], strides = [1, 1, 1, 1]} : vector<4x10x10x32xbf16> to vector<4x8x8x32xbf16>
    %2 = vector.shape_cast %1 : vector<4x8x8x32xbf16> to vector<256x32xbf16>
    %c0_3 = arith.constant 0 : index
    %c0_4 = arith.constant 0 : index
    %c0_5 = arith.constant 0 : index
    %3 = vector.load %arg2[%c0_3, %c0_4, %c0_5] : memref<4x32x64xbf16, #tpu.memory_space<vmem>>, vector<1x32x64xbf16>
    %4 = vector.shape_cast %3 : vector<1x32x64xbf16> to vector<32x64xbf16>
    %cst = arith.constant dense<0.000000e+00> : vector<256x64xf32>
    %5 = tpu.matmul %2, %4, %cst {dimension_numbers = #tpu.dot_dimension_numbers<[1], [0], [0], [1], [0, 0, 1, 1], [], []>} : vector<256x32xbf16>, vector<32x64xbf16>, vector<256x64xf32> -> vector<256x64xf32>
    %6 = vector.extract_strided_slice %0 {offsets = [0, 0, 2, 0], sizes = [4, 8, 8, 32], strides = [1, 1, 1, 1]} : vector<4x10x10x32xbf16> to vector<4x8x8x32xbf16>
    %7 = vector.shape_cast %6 : vector<4x8x8x32xbf16> to vector<256x32xbf16>
    %c1 = arith.constant 1 : index
    %c0_6 = arith.constant 0 : index
    %c0_7 = arith.constant 0 : index
    %8 = vector.load %arg2[%c1, %c0_6, %c0_7] : memref<4x32x64xbf16, #tpu.memory_space<vmem>>, vector<1x32x64xbf16>
    %9 = vector.shape_cast %8 : vector<1x32x64xbf16> to vector<32x64xbf16>
    %cst_8 = arith.constant dense<0.000000e+00> : vector<256x64xf32>
    %10 = tpu.matmul %7, %9, %cst_8 {dimension_numbers = #tpu.dot_dimension_numbers<[1], [0], [0], [1], [0, 0, 1, 1], [], []>} : vector<256x32xbf16>, vector<32x64xbf16>, vector<256x64xf32> -> vector<256x64xf32>
    %11 = arith.addf %5, %10 : vector<256x64xf32>
    %12 = vector.extract_strided_slice %0 {offsets = [0, 2, 0, 0], sizes = [4, 8, 8, 32], strides = [1, 1, 1, 1]} : vector<4x10x10x32xbf16> to vector<4x8x8x32xbf16>
    %13 = vector.shape_cast %12 : vector<4x8x8x32xbf16> to vector<256x32xbf16>
    %c2 = arith.constant 2 : index
    %c0_9 = arith.constant 0 : index
    %c0_10 = arith.constant 0 : index
    %14 = vector.load %arg2[%c2, %c0_9, %c0_10] : memref<4x32x64xbf16, #tpu.memory_space<vmem>>, vector<1x32x64xbf16>
    %15 = vector.shape_cast %14 : vector<1x32x64xbf16> to vector<32x64xbf16>
    %cst_11 = arith.constant dense<0.000000e+00> : vector<256x64xf32>
    %16 = tpu.matmul %13, %15, %cst_11 {dimension_numbers = #tpu.dot_dimension_numbers<[1], [0], [0], [1], [0, 0, 1, 1], [], []>} : vector<256x32xbf16>, vector<32x64xbf16>, vector<256x64xf32> -> vector<256x64xf32>
    %17 = arith.addf %11, %16 : vector<256x64xf32>
    %18 = vector.extract_strided_slice %0 {offsets = [0, 2, 2, 0], sizes = [4, 8, 8, 32], strides = [1, 1, 1, 1]} : vector<4x10x10x32xbf16> to vector<4x8x8x32xbf16>
    %19 = vector.shape_cast %18 : vector<4x8x8x32xbf16> to vector<256x32xbf16>
    %c3 = arith.constant 3 : index
    %c0_12 = arith.constant 0 : index
    %c0_13 = arith.constant 0 : index
    %20 = vector.load %arg2[%c3, %c0_12, %c0_13] : memref<4x32x64xbf16, #tpu.memory_space<vmem>>, vector<1x32x64xbf16>
    %21 = vector.shape_cast %20 : vector<1x32x64xbf16> to vector<32x64xbf16>
    %cst_14 = arith.constant dense<0.000000e+00> : vector<256x64xf32>
    %22 = tpu.matmul %19, %21, %cst_14 {dimension_numbers = #tpu.dot_dimension_numbers<[1], [0], [0], [1], [0, 0, 1, 1], [], []>} : vector<256x32xbf16>, vector<32x64xbf16>, vector<256x64xf32> -> vector<256x64xf32>
    %23 = arith.addf %17, %22 : vector<256x64xf32>
    %c0_15 = arith.constant 0 : index
    %c0_16 = arith.constant 0 : index
    %24 = vector.load %arg3[%c0_15, %c0_16] : memref<1x64xf32, #tpu.memory_space<vmem>>, vector<1x64xf32>
    %25 = vector.broadcast %24 : vector<1x64xf32> to vector<256x64xf32>
    %26 = arith.addf %23, %25 : vector<256x64xf32>
    %27 = vector.shape_cast %26 : vector<256x64xf32> to vector<4x8x8x64xf32>
    %28 = vector.extract_strided_slice %27 {offsets = [0, 0, 0, 0], sizes = [4, 7, 7, 64], strides = [1, 1, 1, 1]} : vector<4x8x8x64xf32> to vector<4x7x7x64xf32>
    %29 = vector.extract_strided_slice %27 {offsets = [0, 0, 1, 0], sizes = [4, 7, 7, 64], strides = [1, 1, 1, 1]} : vector<4x8x8x64xf32> to vector<4x7x7x64xf32>
    %30 = arith.maximumf %28, %29 : vector<4x7x7x64xf32>
    %31 = vector.extract_strided_slice %27 {offsets = [0, 1, 0, 0], sizes = [4, 7, 7, 64], strides = [1, 1, 1, 1]} : vector<4x8x8x64xf32> to vector<4x7x7x64xf32>
    %32 = vector.extract_strided_slice %27 {offsets = [0, 1, 1, 0], sizes = [4, 7, 7, 64], strides = [1, 1, 1, 1]} : vector<4x8x8x64xf32> to vector<4x7x7x64xf32>
    %33 = arith.maximumf %31, %32 : vector<4x7x7x64xf32>
    %34 = arith.maximumf %30, %33 : vector<4x7x7x64xf32>
    %35 = vector.extract_strided_slice %34 {offsets = [0, 0, 0, 0], sizes = [4, 7, 1, 64], strides = [1, 1, 1, 1]} : vector<4x7x7x64xf32> to vector<4x7x1x64xf32>
    %36 = vector.shape_cast %35 : vector<4x7x1x64xf32> to vector<4x7x64xf32>
    %37 = vector.extract_strided_slice %34 {offsets = [0, 0, 1, 0], sizes = [4, 7, 1, 64], strides = [1, 1, 1, 1]} : vector<4x7x7x64xf32> to vector<4x7x1x64xf32>
    %38 = vector.shape_cast %37 : vector<4x7x1x64xf32> to vector<4x7x64xf32>
    %39 = vector.extract_strided_slice %34 {offsets = [0, 0, 2, 0], sizes = [4, 7, 1, 64], strides = [1, 1, 1, 1]} : vector<4x7x7x64xf32> to vector<4x7x1x64xf32>
    %40 = vector.shape_cast %39 : vector<4x7x1x64xf32> to vector<4x7x64xf32>
    %41 = vector.extract_strided_slice %34 {offsets = [0, 0, 3, 0], sizes = [4, 7, 1, 64], strides = [1, 1, 1, 1]} : vector<4x7x7x64xf32> to vector<4x7x1x64xf32>
    %42 = vector.shape_cast %41 : vector<4x7x1x64xf32> to vector<4x7x64xf32>
    %43 = vector.extract_strided_slice %34 {offsets = [0, 0, 4, 0], sizes = [4, 7, 1, 64], strides = [1, 1, 1, 1]} : vector<4x7x7x64xf32> to vector<4x7x1x64xf32>
    %44 = vector.shape_cast %43 : vector<4x7x1x64xf32> to vector<4x7x64xf32>
    %45 = vector.extract_strided_slice %34 {offsets = [0, 0, 5, 0], sizes = [4, 7, 1, 64], strides = [1, 1, 1, 1]} : vector<4x7x7x64xf32> to vector<4x7x1x64xf32>
    %46 = vector.shape_cast %45 : vector<4x7x1x64xf32> to vector<4x7x64xf32>
    %47 = vector.extract_strided_slice %34 {offsets = [0, 0, 6, 0], sizes = [4, 7, 1, 64], strides = [1, 1, 1, 1]} : vector<4x7x7x64xf32> to vector<4x7x1x64xf32>
    %48 = vector.shape_cast %47 : vector<4x7x1x64xf32> to vector<4x7x64xf32>
    %49 = tpu.concatenate %36, %38, %40, %42, %44, %46, %48 in 2 : vector<4x7x64xf32>, vector<4x7x64xf32>, vector<4x7x64xf32>, vector<4x7x64xf32>, vector<4x7x64xf32>, vector<4x7x64xf32>, vector<4x7x64xf32> -> vector<4x7x448xf32>
    %c0_17 = arith.constant 0 : index
    %c0_18 = arith.constant 0 : index
    %c0_19 = arith.constant 0 : index
    %50 = vector.load %arg4[%c0_17, %c0_18, %c0_19] : memref<4x7x448xf32, #tpu.memory_space<vmem>>, vector<4x7x448xf32>
    tpu.vector_store %arg4[%c0_17, %c0_18, %c0_19], %49 {strides = array<i32>} : memref<4x7x448xf32, #tpu.memory_space<vmem>>, vector<4x7x448xf32>,
    return
  }
  func.func @transform_0(%arg0: i32) -> (i32, i32, i32, i32) {
    %c0_i32 = arith.constant 0 : i32
    %c0_i32_0 = arith.constant 0 : i32
    %c0_i32_1 = arith.constant 0 : i32
    %c0_i32_2 = arith.constant 0 : i32
    return %arg0, %c0_i32, %c0_i32_0, %c0_i32_1 : i32, i32, i32, i32
  }
  func.func @transform_1(%arg0: i32) -> (i32, i32, i32) {
    %c0_i32 = arith.constant 0 : i32
    %c0_i32_0 = arith.constant 0 : i32
    %c0_i32_1 = arith.constant 0 : i32
    %c0_i32_2 = arith.constant 0 : i32
    return %c0_i32, %c0_i32_0, %c0_i32_1 : i32, i32, i32
  }
  func.func @transform_2(%arg0: i32) -> (i32, i32) {
    %c0_i32 = arith.constant 0 : i32
    %c0_i32_0 = arith.constant 0 : i32
    %c0_i32_1 = arith.constant 0 : i32
    return %c0_i32, %c0_i32_0 : i32, i32
  }
  func.func @transform_3(%arg0: i32) -> (i32, i32, i32) {
    %c0_i32 = arith.constant 0 : i32
    %c0_i32_0 = arith.constant 0 : i32
    %c0_i32_1 = arith.constant 0 : i32
    return %arg0, %c0_i32, %c0_i32_0 : i32, i32, i32
  }
}

</mosaic_0001>

<bundles_post_ra>
// kernel: conv2_forward.1
= control target key start
LH: loop header
LB: loop body
LE: loop exit
PB: predicated region body
PF: predicated region fallthrough
CT: control target
= control target key end

     0   :  { %s2781_s12 = smov 0   ;;  %s3832_s0 = inlined_call_operand.vmem [shape: bf16[8,10,10,32], index: 0, kind: input, shape index: {}]   ;;  %s3833_s1 = inlined_call_operand.vmem [shape: bf16[4,32,64], index: 1, kind: input, shape index: {}]   ;;  %s3834_s2 = inlined_call_operand.vmem [shape: f32[1,64], index: 2, kind: input, shape index: {}]   ;;  %s3835_s3 = inlined_call_operand.vmem [shape: f32[8,7,448], index: 3, kind: output, shape index: {}]  }
   0x1 LB: > { %s2224_s13 = sadd.s32 4294967295, %s2758_s12   ;;  %p2228_p0 = scmp.ge.s32.totalorder %s2758_s12, 1  ;;  %s2758_s12 = sphi %s2781_s12, %s13_s12  }
   0x2   : > { %p139_p1 = scmp.lt.s32.totalorder %s2758_s12, 3 }
   0x4   : > { %p140_p2 = pnand %p2228_p0, %p139_p1 }
   0x5   : > { %v2724_v0 = vld [vmem:[%s3833_s1 + $0x20] sm:$0xff] (!%p140_p2)   ;;  %s2229_s16 = sshll.u32 (!%p140_p2), %s2224_s13, 2  ;;  %v2725_v1 = vld [vmem:[%s3833_s1 + $0x10] sm:$0xff] (!%p140_p2)   ;;  %v2726_v2 = vld [vmem:[%s3833_s1 + $0x28] sm:$0xff] (!%p140_p2)   ;;  %vm328_vm0 = vcmask (!%p140_p2), 1042432   ;;  %vm329_vm1 = vcmask (!%p140_p2), 1046532  }
   0x6   : > { %143 = sbr.rel (%p140_p2) target bundleno = 518 (0x206), region = 32  ;;  %p166_p3 = scmp.lt.s32.totalorder (!%p140_p2), %s2229_s16, 7  ;;  %2546 = vmatprep.subr.bf16.mxu0 (!%p140_p2), %v2724_v0  ;;  %2474 = vmatprep.subr.bf16.mxu1 (!%p140_p2), %v2725_v1  ;;  %v2727_v3 = vld [vmem:[%s3833_s1 + $0x18] sm:$0xff] (!%p140_p2)   ;;  %v2807_v4 = vld [vmem:[%s3833_s1] sm:$0xff] (!%p140_p2)   ;;  %v2731_v5 = vld [vmem:[%s3833_s1 + $0x30] sm:$0xff] (!%p140_p2)   ;;  %vm524_vm2 = vcmask (!%p140_p2), 261120  }
   0x7   : > { %2547 = vmatpush3.bf16.msra.mxu0 (!%p140_p2), %v2724_v0  ;;  %2475 = vmatpush3.bf16.msra.mxu1 (!%p140_p2), %v2725_v1  ;;  %vm2821_vm3 = vmor (!%p140_p2), %vm328_vm0, %vm329_vm1  ;;  %v2741_v21 = vld [vmem:[%s3833_s1 + $0x38] sm:$0xff] (!%p140_p2)   ;;  %v2740_v56 = vld [vmem:[%s3833_s1 + $0x8] sm:$0xff] (!%p140_p2)   ;;  %vm1743_vm4 = vcmask (!%p140_p2), 1041409   ;;  %vm1746_vm5 = vcmask (!%p140_p2), 1042434   ;;  %vm1749_vm6 = vcmask (!%p140_p2), 1043459   ;;  %vm1752_vm7 = vcmask (!%p140_p2), 1044484  }
   0x8   : > { %2548 = vmatprep.subr.bf16.mxu0 (!%p140_p2), %v2726_v2  ;;  %2476 = vmatprep.subr.bf16.mxu1 (!%p140_p2), %v2727_v3  ;;  %vm1755_vm8 = vcmask (!%p140_p2), 1045509   ;;  %vm1758_vm9 = vcmask (!%p140_p2), 1046534   ;;  %vm2152_vm10 = vcmask (!%p140_p2), 522240   ;;  %s2760_s15 = smov (!%p140_p2), 64   ;;  %vm2136_vm11 = vcmask (!%p140_p2), 523264  }
   0xb   : > { %2549 = vmatpush3.bf16.msra.mxu0 (!%p140_p2), %v2726_v2  ;;  %2477 = vmatpush3.bf16.msra.mxu1 (!%p140_p2), %v2727_v3 }
   0xc   : > { %2582 = vmatprep.subr.bf16.mxu0 (!%p140_p2), %v2731_v5  ;;  %2510 = vmatprep.subr.bf16.mxu1 (!%p140_p2), %v2807_v4 }
   0xd   : > { %s3849_s16 = smov (!%p166_p3, %s2229_s16), 7 }
   0xe   : > { %s2714_s23 = smul.u32 80, %s3849_s16  ;;  %s2401_s10 = sshll.u32 %s3849_s16, 5 }
   0xf   : > { %s3316_s14 = scalar_lea.vmem %s3835_s3, %s2401_s10 }
  0x10   : > { %s2815_s30 = scalar_lea.vmem %s3832_s0, %s2714_s23 }
  0x11   : > { %v184_v6 = vld [vmem:[%s2815_s30 + $0x10] sm:$0xf]  ;;  %v185_v7 = vld [vmem:[%s2815_s30 + $0x14] sm:$0x1]  ;;  %v186_v8 = vld [vmem:[%s2815_s30 + $0x18] sm:$0xf] }
  0x12   : > { %v187_v9 = vld [vmem:[%s2815_s30 + $0x1c] sm:$0x1]  ;;  %v2236_v11 = vrot.slane %v184_v6, 9  ;;  %v341_v12 = vrot.slane %v185_v7, 5  ;;  %v2237_v13 = vrot.slane %v186_v8, 9  ;;  %v2825_v14 = vcombine.low %v184_v6, %v186_v8 }
  0x13   : > { %v345_v15 = vrot.slane %v187_v9, 5  ;;  %v188_v16 = vld [vmem:[%s2815_s30 + $0x20] sm:$0xf]  ;;  %v190_v17 = vld [vmem:[%s2815_s30 + $0x28] sm:$0xf] }
  0x14   : > { %2550 = vmatprep.mubr.msk.bf16.mxu0 %vm524_vm2, %v2825_v14  ;;  %v2832_v18 = vcombine.low %v188_v16, %v190_v17  ;;  %v2835_v19 = vld [vmem:[%s2815_s30] sm:$0xf]  ;;  %v181_v20 = vld [vmem:[%s2815_s30 + $0x4] sm:$0x1]  ;;  %v342_v22 = vsel %vm2821_vm3, %v2236_v11, %v341_v12  ;;  %v2846_v24 = vld [vmem:[%s2815_s30 + $0x8] sm:$0xf] }
  0x15   : > { %v346_v23 = vsel %vm2821_vm3, %v2237_v13, %v345_v15  ;;  %v183_v25 = vld [vmem:[%s2815_s30 + $0xc] sm:$0x1]  ;;  %v2234_v26 = vrot.slane %v2835_v19, 9  ;;  %v333_v27 = vrot.slane %v181_v20, 5  ;;  %v2235_v28 = vrot.slane %v2846_v24, 9 }
  0x16   : > { %2551 = vmatmul.mubr.msk.bf16.vlgmr.msra.gmra.mrb[0].mxu0 %vm524_vm2, %v2832_v18  ;;  %v337_v29 = vrot.slane %v183_v25, 5  ;;  %v192_v30 = vld [vmem:[%s2815_s30 + $0x30] sm:$0xf]  ;;  %v194_v31 = vld [vmem:[%s2815_s30 + $0x38] sm:$0xf]  ;;  %v2238_v32 = vrot.slane %v188_v16, 9  ;;  %v2867_v39 = vcombine.low %v342_v22, %v346_v23 }
  0x17   : > { %v2239_v33 = vrot.slane %v190_v17, 9  ;;  %v334_v34 = vsel %vm2821_vm3, %v2234_v26, %v333_v27  ;;  %2583 = vmatpush3.bf16.msra.mxu0 %v2731_v5  ;;  %v2857_v35 = vcombine.low %v192_v30, %v194_v31  ;;  %v2860_v36 = vld [vmem:[%s2815_s30 + $0x40] sm:$0xf]  ;;  %v2863_v37 = vld [vmem:[%s2815_s30 + $0x48] sm:$0xf]  ;;  %v2240_v40 = vrot.slane %v192_v30, 9 }
  0x18   : > { %v338_v38 = vsel %vm2821_vm3, %v2235_v28, %v337_v29  ;;  %v2241_v41 = vrot.slane %v194_v31, 9  ;;  %v189_v42 = vld [vmem:[%s2815_s30 + $0x24] sm:$0x1]  ;;  %v191_v43 = vld [vmem:[%s2815_s30 + $0x2c] sm:$0x1]  ;;  %2584 = vmatprep.subr.bf16.mxu0 %v2741_v21  ;;  %v2342_v49 = vcombine.low %v2860_v36, %v2863_v37 }
  0x19   : > { %v2270_v44 = vcombine.low %v334_v34, %v338_v38  ;;  %2554 = vmatprep.mubr.msk.bf16.mxu0 %vm524_vm2, %v2857_v35  ;;  %v349_v45 = vrot.slane %v189_v42, 5  ;;  %v353_v46 = vrot.slane %v191_v43, 5  ;;  %v193_v47 = vld [vmem:[%s2815_s30 + $0x34] sm:$0x1]  ;;  %v195_v48 = vld [vmem:[%s2815_s30 + $0x3c] sm:$0x1] }
  0x1a   : > { %v357_v50 = vrot.slane %v193_v47, 5  ;;  %v361_v51 = vrot.slane %v195_v48, 5  ;;  %v204_v52 = vld [vmem:[%s2815_s30 + $0x60] sm:$0xf]  ;;  %v206_v53 = vld [vmem:[%s2815_s30 + $0x68] sm:$0xf] }
  0x1b   : > { %2478 = vmatprep.mubr.msk.bf16.mxu1 %vm524_vm2, %v2270_v44  ;;  %v350_v54 = vsel %vm2821_vm3, %v2238_v32, %v349_v45  ;;  %v354_v55 = vsel %vm2821_vm3, %v2239_v33, %v353_v46  ;;  %2585 = vmatpush3.bf16.msra.mxu0 %v2741_v21  ;;  %v2891_v58 = vcombine.low %v204_v52, %v206_v53  ;;  %v2894_v59 = vld [vmem:[%s2815_s30 + $0x50] sm:$0xf]  ;;  %v201_v60 = vld [vmem:[%s2815_s30 + $0x54] sm:$0x1]  ;;  %v2898_v61 = vld [vmem:[%s2815_s30 + $0x58] sm:$0xf] }
  0x1c   : > { %2479 = vmatmul.mubr.msk.bf16.vlgmr.msra.gmra.mrb[0].mxu1 %vm524_vm2, %v2867_v39  ;;  %v2889_v57 = vcombine.low %v350_v54, %v354_v55  ;;  %v358_v62 = vsel %vm2821_vm3, %v2240_v40, %v357_v50  ;;  %v362_v63 = vsel %vm2821_vm3, %v2241_v41, %v361_v51  ;;  %v203_v0 = vld [vmem:[%s2815_s30 + $0x5c] sm:$0x1]  ;;  %v205_v1 = vld [vmem:[%s2815_s30 + $0x64] sm:$0x1]  ;;  %v2242_v2 = vrot.slane %v2894_v59, 9 }
  0x1d   : > { %2511 = vmatpush3.bf16.msra.mxu1 %v2807_v4  ;;  %v365_v3 = vrot.slane %v201_v60, 5  ;;  %v2243_v4 = vrot.slane %v2898_v61, 9  ;;  %v369_v5 = vrot.slane %v203_v0, 5  ;;  %v207_v6 = vld [vmem:[%s2815_s30 + $0x6c] sm:$0x1]  ;;  %v2244_v7 = vrot.slane %v204_v52, 9 }
  0x1e   : > { %2555 = vmatmul.mubr.msk.bf16.gmra.mrb[4].mxu0 %vm524_vm2, %v2342_v49  ;;  %2482 = vmatprep.mubr.msk.bf16.mxu1 %vm524_vm2, %v2889_v57  ;;  %v208_v8 = vld [vmem:[%s2815_s30 + $0x70] sm:$0xf]  ;;  %v210_v9 = vld [vmem:[%s2815_s30 + $0x78] sm:$0xf]  ;;  %v2919_v12 = vcombine.low %v358_v62, %v362_v63  ;;  %v2245_v13 = vrot.slane %v206_v53, 9  ;;  %v373_v22 = vrot.slane %v205_v1, 5  ;;  %v3842_v10 = vcombine.low %v2894_v59, %v2898_v61 }
  0x1f   : > { %2558 = vmatprep.mubr.msk.bf16.mxu0 %vm524_vm2, %v2891_v58  ;;  %2512 = vmatprep.subr.bf16.mxu1 %v2740_v56  ;;  %v366_v15 = vsel %vm2821_vm3, %v2242_v2, %v365_v3  ;;  %v370_v16 = vsel %vm2821_vm3, %v2243_v4, %v369_v5  ;;  %v212_v17 = vld [vmem:[%s2815_s30 + $0x80] sm:$0xf]  ;;  %v214_v20 = vld [vmem:[%s2815_s30 + $0x88] sm:$0xf]  ;;  %v377_v23 = vrot.slane %v207_v6, 5  ;;  %v2246_v27 = vrot.slane %v208_v8, 9 }
  0x20   : > { %v2274_v21 = vcombine.low %v366_v15, %v370_v16  ;;  %v209_v25 = vld [vmem:[%s2815_s30 + $0x74] sm:$0x1]  ;;  %v211_v26 = vld [vmem:[%s2815_s30 + $0x7c] sm:$0x1]  ;;  %v2247_v28 = vrot.slane %v210_v9, 9  ;;  %v2929_v29 = vcombine.low %v208_v8, %v210_v9  ;;  %v2931_v30 = vcombine.low %v212_v17, %v214_v20 }
  0x21   : > { %2513 = vmatpush3.bf16.msra.mxu1 %v2740_v56  ;;  %v381_v31 = vrot.slane %v209_v25, 5  ;;  %v385_v32 = vrot.slane %v211_v26, 5  ;;  %v2248_v33 = vrot.slane %v212_v17, 9  ;;  %v2249_v34 = vrot.slane %v214_v20, 9  ;;  %v2941_v41 = vld [vmem:[%s2815_s30 + $0x90] sm:$0xf] }
  0x22   : > { %v374_v38 = vsel %vm2821_vm3, %v2244_v7, %v373_v22  ;;  %v378_v40 = vsel %vm2821_vm3, %v2245_v13, %v377_v23  ;;  %v213_v42 = vld [vmem:[%s2815_s30 + $0x84] sm:$0x1]  ;;  %v215_v43 = vld [vmem:[%s2815_s30 + $0x8c] sm:$0x1]  ;;  %v2948_v44 = vld [vmem:[%s2815_s30 + $0x98] sm:$0xf] }
  0x23   : > { %v382_v45 = vsel %vm2821_vm3, %v2246_v27, %v381_v31  ;;  %v386_v46 = vsel %vm2821_vm3, %v2247_v28, %v385_v32  ;;  %v2955_v47 = vld [vmem:[%s2815_s30 + $0xa0] sm:$0xf]  ;;  %v221_v48 = vld [vmem:[%s2815_s30 + $0xa4] sm:$0x1]  ;;  %v2961_v49 = vld [vmem:[%s2815_s30 + $0xa8] sm:$0xf]  ;;  %v2964_v51 = vcombine.low %v374_v38, %v378_v40  ;;  %v2343_v60 = vcombine.low %v2941_v41, %v2948_v44 }
  0x24   : > { %2483 = vmatmul.mubr.msk.bf16.gmra.mrb[4].mxu1 %vm524_vm2, %v2919_v12  ;;  %v223_v50 = vld [vmem:[%s2815_s30 + $0xac] sm:$0x1]  ;;  %v389_v52 = vrot.slane %v213_v42, 5  ;;  %v393_v53 = vrot.slane %v215_v43, 5  ;;  %v224_v54 = vld [vmem:[%s2815_s30 + $0xb0] sm:$0xf]  ;;  %v2972_v62 = vcombine.low %v382_v45, %v386_v46 }
  0x25   : > { %2486 = vmatprep.mubr.msk.bf16.mxu1 %vm524_vm2, %v2274_v21  ;;  %v226_v55 = vld [vmem:[%s2815_s30 + $0xb8] sm:$0xf]  ;;  %v2250_v63 = vrot.slane %v2955_v47, 9  ;;  %v397_v0 = vrot.slane %v221_v48, 5  ;;  %v2251_v1 = vrot.slane %v2961_v49, 9  ;;  %v401_v2 = vrot.slane %v223_v50, 5 }
  0x26   : > { %2559 = vmatmul.mubr.msk.bf16.gmra.mrb[8].mxu0 %vm524_vm2, %v2929_v29  ;;  %v2364_v3 = vrot.slane %v2860_v36, 9  ;;  %v2979_v6 = vcombine.low %v224_v54, %v226_v55  ;;  %v225_v7 = vld [vmem:[%s2815_s30 + $0xb4] sm:$0x1]  ;;  %v390_v9 = vsel %vm2821_vm3, %v2248_v33, %v389_v52  ;;  %v394_v13 = vsel %vm2821_vm3, %v2249_v34, %v393_v53  ;;  %v227_v16 = vld [vmem:[%s2815_s30 + $0xbc] sm:$0x1] }
  0x27   : > { %2562 = vmatprep.mubr.msk.bf16.mxu0 %vm524_vm2, %v2931_v30  ;;  %v2252_v15 = vrot.slane %v224_v54, 9  ;;  %v2991_v17 = vld [vmem:[%s2815_s30 + $0xd0] sm:$0xf]  ;;  %v2996_v20 = vld [vmem:[%s2815_s30 + $0xd8] sm:$0xf]  ;;  %v2253_v23 = vrot.slane %v226_v55, 9  ;;  %v398_v27 = vsel %vm2821_vm3, %v2250_v63, %v397_v0  ;;  %v402_v28 = vsel %vm2821_vm3, %v2251_v1, %v401_v2 }
  0x28   : > { %v229_v21 = vld [vmem:[%s2815_s30 + $0xc4] sm:$0x1]  ;;  %v231_v22 = vld [vmem:[%s2815_s30 + $0xcc] sm:$0x1]  ;;  %v228_v25 = vld [vmem:[%s2815_s30 + $0xc0] sm:$0xf]  ;;  %v3007_v32 = vcombine.low %v390_v9, %v394_v13  ;;  %v2278_v50 = vcombine.low %v398_v27, %v402_v28  ;;  %v3041_v9 = vcombine.low %v2991_v17, %v2996_v20 }
  0x29   : > { %v230_v26 = vld [vmem:[%s2815_s30 + $0xc8] sm:$0xf]  ;;  %v405_v31 = vrot.slane %v225_v7, 5  ;;  %v2254_v33 = vrot.slane %v228_v25, 9  ;;  %v409_v38 = vrot.slane %v227_v16, 5  ;;  %v2256_v40 = vrot.slane %v2991_v17, 9 }
  0x2a   : > { %v2255_v34 = vrot.slane %v230_v26, 9  ;;  %v3014_v43 = vld [vmem:[%s2815_s30 + $0xe0] sm:$0xf]  ;;  %v413_v45 = vrot.slane %v229_v21, 5  ;;  %v417_v46 = vrot.slane %v231_v22, 5  ;;  %v3024_v55 = vcombine.low %v228_v25, %v230_v26 }
  0x2b   : > { %v233_v48 = vld [vmem:[%s2815_s30 + $0xd4] sm:$0x1]  ;;  %v235_v52 = vld [vmem:[%s2815_s30 + $0xdc] sm:$0x1]  ;;  %v3019_v53 = vld [vmem:[%s2815_s30 + $0xf0] sm:$0xf]  ;;  %v410_v7 = vsel %vm2821_vm3, %v2253_v23, %v409_v38 }
  0x2c   : > { %2487 = vmatmul.mubr.msk.bf16.gmra.mrb[8].mxu1 %vm524_vm2, %v2964_v51  ;;  %v3022_v54 = vld [vmem:[%s2815_s30 + $0xf8] sm:$0xf]  ;;  %v238_v63 = vld [vmem:[%s2815_s30 + $0xe8] sm:$0xf]  ;;  %v3030_v0 = vld [vmem:[%s2815_s30 + $0xf4] sm:$0x1]  ;;  %v414_v16 = vsel %vm2821_vm3, %v2254_v33, %v413_v45  ;;  %v418_v21 = vsel %vm2821_vm3, %v2255_v34, %v417_v46 }
  0x2d   : > { %2490 = vmatprep.mubr.msk.bf16.mxu1 %vm524_vm2, %v2972_v62  ;;  %v3033_v1 = vld [vmem:[%s2815_s30 + $0xfc] sm:$0x1]  ;;  %v2368_v13 = vrot.slane %v3014_v43, 9  ;;  %v421_v22 = vrot.slane %v233_v48, 5  ;;  %v425_v23 = vrot.slane %v235_v52, 5  ;;  %v2258_v17 = vrot.slane %v3019_v53, 9 }
  0x2e   : > { %2563 = vmatmul.mubr.msk.bf16.gmra.mrb[12].mxu0 %vm524_vm2, %v2343_v60  ;;  %v406_v60 = vsel %vm2821_vm3, %v2252_v15, %v405_v31  ;;  %v2369_v15 = vrot.slane %v238_v63, 9  ;;  %v429_v25 = vrot.slane %v3030_v0, 5  ;;  %v2259_v26 = vrot.slane %v3022_v54, 9  ;;  %v197_v28 = vld [vmem:[%s2815_s30 + $0x44] sm:$0x1] }
  0x2f   : > { %2566 = vmatprep.mubr.msk.bf16.mxu0 %vm524_vm2, %v2979_v6  ;;  %v433_v27 = vrot.slane %v3033_v1, 5  ;;  %v3059_v31 = vld [vmem:[%s2815_s30 + $0x100] sm:$0xf]  ;;  %v3062_v33 = vld [vmem:[%s2815_s30 + $0x108] sm:$0xf]  ;;  %v1255_v46 = vrot.slane %v197_v28, 5  ;;  %v3075_v0 = vcombine.low %v406_v60, %v410_v7  ;;  %v2344_v1 = vcombine.low %v3014_v43, %v238_v63 }
  0x30   : > { %v3065_v34 = vld [vmem:[%s2815_s30 + $0x130] sm:$0xf]  ;;  %v3068_v38 = vld [vmem:[%s2815_s30 + $0x138] sm:$0xf]  ;;  %v199_v45 = vld [vmem:[%s2815_s30 + $0x4c] sm:$0x1]  ;;  %v3078_v2 = vcombine.low %v414_v16, %v418_v21  ;;  %v422_v56 = vsel %vm2821_vm3, %v2256_v40, %v421_v22  ;;  %v3104_v36 = vcombine.low %v3059_v31, %v3062_v33 }
  0x31   : > { %v1259_v48 = vrot.slane %v199_v45, 5  ;;  %v219_v52 = vld [vmem:[%s2815_s30 + $0x9c] sm:$0x1]  ;;  %v237_v11 = vld [vmem:[%s2815_s30 + $0xe4] sm:$0x1]  ;;  %v2370_v42 = vrot.slane %v3065_v34, 9  ;;  %v3091_v60 = vsel %vm2821_vm3, %v2364_v3, %v1255_v46 }
  0x32   : > { %v239_v8 = vld [vmem:[%s2815_s30 + $0xec] sm:$0x1]  ;;  %v257_v5 = vld [vmem:[%s2815_s30 + $0x134] sm:$0x1]  ;;  %v2371_v4 = vrot.slane %v3068_v38, 9  ;;  %v3838_v43 = vrot.slane %v2863_v37, 9 }
  0x33   : > { %v259_v40 = vld [vmem:[%s2815_s30 + $0x13c] sm:$0x1]  ;;  %v1267_v21 = vrot.slane %v219_v52, 5  ;;  %v1271_v22 = vrot.slane %v237_v11, 5  ;;  %v1275_v3 = vrot.slane %v239_v8, 5  ;;  %v1279_v28 = vrot.slane %v257_v5, 5 }
  0x34   : > { %2491 = vmatmul.mubr.msk.bf16.gmra.mrb[12].mxu1 %vm524_vm2, %v3007_v32  ;;  %v3097_v63 = vsel %vm2821_vm3, %v3838_v43, %v1259_v48  ;;  %v1283_v37 = vrot.slane %v259_v40, 5  ;;  %v3839_v45 = vrot.slane %v2996_v20, 9  ;;  %v3840_v11 = vrot.slane %v2941_v41, 9  ;;  %v245_v43 = vld [vmem:[%s2815_s30 + $0x104] sm:$0x1] }
  0x35   : > { %2494 = vmatprep.mubr.msk.bf16.mxu1 %vm524_vm2, %v2278_v50  ;;  %v217_v50 = vld [vmem:[%s2815_s30 + $0x94] sm:$0x1]  ;;  %v2376_v7 = vcombine.low %v3091_v60, %v3097_v63  ;;  %v3841_v8 = vrot.slane %v2948_v44, 9  ;;  %v3134_v44 = vsel %vm2821_vm3, %v2369_v15, %v1275_v3  ;;  %v3138_v20 = vsel %vm2821_vm3, %v2370_v42, %v1279_v28  ;;  %v247_v40 = vld [vmem:[%s2815_s30 + $0x10c] sm:$0x1] }
  0x36   : > { %2567 = vmatmul.mubr.msk.bf16.gmra.mrb[16].mxu0 %vm524_vm2, %v3024_v55  ;;  %v1263_v16 = vrot.slane %v217_v50, 5  ;;  %v426_v46 = vsel %vm2821_vm3, %v3839_v45, %v425_v23  ;;  %v3126_v50 = vsel %vm2821_vm3, %v2368_v13, %v1271_v22  ;;  %v3142_v13 = vsel %vm2821_vm3, %v2371_v4, %v1283_v37  ;;  %v248_v23 = vld [vmem:[%s2815_s30 + $0x110] sm:$0xf] }
  0x37   : > { %2570 = vmatprep.mubr.msk.bf16.mxu0 %vm524_vm2, %v3041_v9  ;;  %v3122_v5 = vsel %vm2821_vm3, %v3841_v8, %v1267_v21  ;;  %v430_v52 = vsel %vm2821_vm3, %v2258_v17, %v429_v25  ;;  %v434_v15 = vsel %vm2821_vm3, %v2259_v26, %v433_v27  ;;  %v251_v21 = vld [vmem:[%s2815_s30 + $0x11c] sm:$0x1]  ;;  %v2281_v22 = vcombine.low %v422_v56, %v426_v46  ;;  %v252_v26 = vld [vmem:[%s2815_s30 + $0x120] sm:$0xf]  ;;  %v254_v27 = vld [vmem:[%s2815_s30 + $0x128] sm:$0xf] }
  0x38   : > { %v3116_v48 = vsel %vm2821_vm3, %v3840_v11, %v1263_v16  ;;  %v249_v16 = vld [vmem:[%s2815_s30 + $0x114] sm:$0x1]  ;;  %v2260_v17 = vrot.slane %v3059_v31, 9  ;;  %v2261_v25 = vrot.slane %v3062_v33, 9  ;;  %v2262_v3 = vrot.slane %v248_v23, 9 }
  0x39   : > { %v2282_v28 = vcombine.low %v430_v52, %v434_v15  ;;  %v437_v37 = vrot.slane %v245_v43, 5  ;;  %v441_v45 = vrot.slane %v247_v40, 5  ;;  %v445_v4 = vrot.slane %v249_v16, 5  ;;  %v255_v52 = vld [vmem:[%s2815_s30 + $0x12c] sm:$0x1] }
  0x3a   : > { %v449_v42 = vrot.slane %v251_v21, 5  ;;  %v2319_v41 = vcombine.low %v252_v26, %v254_v27  ;;  %v2264_v43 = vrot.slane %v252_v26, 9  ;;  %v2265_v40 = vrot.slane %v254_v27, 9 }
  0x3b   : > { %v438_v56 = vsel %vm2821_vm3, %v2260_v17, %v437_v37  ;;  %v442_v31 = vsel %vm2821_vm3, %v2261_v25, %v441_v45  ;;  %v446_v33 = vsel %vm2821_vm3, %v2262_v3, %v445_v4  ;;  %v457_v21 = vrot.slane %v255_v52, 5 }
  0x3c   : > { %2495 = vmatmul.mubr.msk.bf16.gmra.mrb[16].mxu1 %vm524_vm2, %v3075_v0  ;;  %v2283_v15 = vcombine.low %v438_v56, %v442_v31  ;;  %v2345_v17 = vcombine.low %v3065_v34, %v3068_v38  ;;  %v2304_v26 = vcombine.low %v2835_v19, %v2846_v24  ;;  %v3845_v19 = vcombine.low %v3126_v50, %v3134_v44 }
  0x3d   : > { %2498 = vmatprep.mubr.msk.bf16.mxu1 %vm524_vm2, %v3078_v2  ;;  %v458_v4 = vsel %vm2821_vm3, %v2265_v40, %v457_v21  ;;  %v3846_v24 = vcombine.low %v3019_v53, %v3022_v54 }
  0x3e   : > { %2571 = vmatmul.mubr.msk.bf16.gmra.mrb[20].mxu0 %vm524_vm2, %v2344_v1  ;;  %v250_v1 = vld [vmem:[%s2815_s30 + $0x118] sm:$0xf] }
  0x3f   : > { %2574 = vmatprep.mubr.msk.bf16.mxu0 %vm524_vm2, %v3104_v36  ;;  %v2263_v11 = vrot.slane %v250_v1, 9  ;;  %v2318_v8 = vcombine.low %v248_v23, %v250_v1  ;;  %v253_v23 = vld [vmem:[%s2815_s30 + $0x124] sm:$0x1] }
  0x40   : > { %v453_v16 = vrot.slane %v253_v23, 5 }
  0x41   : > { %v450_v46 = vsel %vm2821_vm3, %v2263_v11, %v449_v42 }
  0x42   : > { %v2284_v1 = vcombine.low %v446_v33, %v450_v46  ;;  %v454_v42 = vsel %vm2821_vm3, %v2264_v43, %v453_v16 }
  0x43   : > { %v2285_v25 = vcombine.low %v454_v42, %v458_v4 }
  0x44   : > { %2499 = vmatmul.mubr.msk.bf16.gmra.mrb[20].mxu1 %vm524_vm2, %v2281_v22 }
  0x45   : > { %2502 = vmatprep.mubr.msk.bf16.mxu1 %vm524_vm2, %v2282_v28 }
  0x46   : > { %2575 = vmatmul.mubr.msk.bf16.gmra.mrb[24].mxu0 %vm524_vm2, %v2318_v8 }
  0x47   : > { %2578 = vmatprep.mubr.msk.bf16.mxu0 %vm524_vm2, %v2319_v41 }
  0x4c   : > { %2503 = vmatmul.mubr.msk.bf16.gmra.mrb[24].mxu1 %vm524_vm2, %v2283_v15 }
  0x4d   : > { %2506 = vmatprep.mubr.msk.bf16.mxu1 %vm524_vm2, %v2284_v1 }
  0x4e   : > { %2579 = vmatmul.mubr.msk.bf16.gmra.mrb[28].mxu0 %vm524_vm2, %v2345_v17 }
  0x4f   : > { %2586 = vmatprep.mubr.msk.bf16.mxu0 %vm524_vm2, %v2867_v39 }
  0x54   : > { %2507 = vmatmul.mubr.msk.bf16.gmra.mrb[28].mxu1 %vm524_vm2, %v2285_v25 }
  0x55   : > { %2514 = vmatprep.mubr.msk.bf16.mxu1 %vm524_vm2, %v2304_v26 }
  0x56   : > { %2587 = vmatmul.mubr.msk.bf16.vlgmr.msra.gmra.mrb[0].mxu0 %vm524_vm2, %v2889_v57 }
  0x57   : > { %2590 = vmatprep.mubr.msk.bf16.mxu0 %vm524_vm2, %v2919_v12  ;;  %v3265_v12 = vld [vmem:[%s3834_s2] ss:$0 sm:$0xff] }
  0x5c   : > { %2515 = vmatmul.mubr.msk.bf16.vlgmr.msra.gmra.mrb[0].mxu1 %vm524_vm2, %v2825_v14  ;;  %v3843_v14 = vcombine.low %v3116_v48, %v3122_v5 }
  0x5d   : > { %2518 = vmatprep.mubr.msk.bf16.mxu1 %vm524_vm2, %v2832_v18  ;;  %v3844_v18 = vcombine.low %v2955_v47, %v2961_v49 }
  0x5e   : > { %2591 = vmatmul.mubr.msk.bf16.gmra.mrb[4].mxu0 %vm524_vm2, %v2376_v7 }
  0x5f   : > { %2594 = vmatprep.mubr.msk.bf16.mxu0 %vm524_vm2, %v2964_v51 }
  0x64   : > { %2519 = vmatmul.mubr.msk.bf16.gmra.mrb[4].mxu1 %vm524_vm2, %v2857_v35  ;;  %v3847_v35 = vcombine.low %v3138_v20, %v3142_v13 }
  0x65   : > { %2522 = vmatprep.mubr.msk.bf16.mxu1 %vm524_vm2, %v3842_v10 }
  0x66   : > { %2595 = vmatmul.mubr.msk.bf16.gmra.mrb[8].mxu0 %vm524_vm2, %v2972_v62 }
  0x67   : > { %2598 = vmatprep.mubr.msk.bf16.mxu0 %vm524_vm2, %v3007_v32 }
  0x6c   : > { %2523 = vmatmul.mubr.msk.bf16.gmra.mrb[8].mxu1 %vm524_vm2, %v2891_v58 }
  0x6d   : > { %2526 = vmatprep.mubr.msk.bf16.mxu1 %vm524_vm2, %v2929_v29 }
  0x6e   : > { %2599 = vmatmul.mubr.msk.bf16.gmra.mrb[12].mxu0 %vm524_vm2, %v3843_v14 }
  0x6f   : > { %2602 = vmatprep.mubr.msk.bf16.mxu0 %vm524_vm2, %v3075_v0 }
  0x74   : > { %2527 = vmatmul.mubr.msk.bf16.gmra.mrb[12].mxu1 %vm524_vm2, %v2931_v30 }
  0x75   : > { %2530 = vmatprep.mubr.msk.bf16.mxu1 %vm524_vm2, %v3844_v18 }
  0x76   : > { %2603 = vmatmul.mubr.msk.bf16.gmra.mrb[16].mxu0 %vm524_vm2, %v3078_v2 }
  0x77   : > { %2606 = vmatprep.mubr.msk.bf16.mxu0 %vm524_vm2, %v2281_v22 }
  0x7c   : > { %2531 = vmatmul.mubr.msk.bf16.gmra.mrb[16].mxu1 %vm524_vm2, %v2979_v6 }
  0x7d   : > { %2534 = vmatprep.mubr.msk.bf16.mxu1 %vm524_vm2, %v3024_v55 }
  0x7e   : > { %2607 = vmatmul.mubr.msk.bf16.gmra.mrb[20].mxu0 %vm524_vm2, %v3845_v19 }
  0x7f   : > { %2610 = vmatprep.mubr.msk.bf16.mxu0 %vm524_vm2, %v2283_v15 }
  0x84   : > { %2535 = vmatmul.mubr.msk.bf16.gmra.mrb[20].mxu1 %vm524_vm2, %v3041_v9 }
  0x85   : > { %2538 = vmatprep.mubr.msk.bf16.mxu1 %vm524_vm2, %v3846_v24 }
  0x86   : > { %2611 = vmatmul.mubr.msk.bf16.gmra.mrb[24].mxu0 %vm524_vm2, %v2284_v1 }
  0x87   : > { %2614 = vmatprep.mubr.msk.bf16.mxu0 %vm524_vm2, %v2285_v25 }
  0x8c   : > { %2539 = vmatmul.mubr.msk.bf16.gmra.mrb[24].mxu1 %vm524_vm2, %v3104_v36 }
  0x8d   : > { %2542 = vmatprep.mubr.msk.bf16.mxu1 %vm524_vm2, %v2318_v8 }
  0x8e   : > { %2615 = vmatmul.mubr.msk.bf16.gmra.mrb[28].mxu0 %vm524_vm2, %v3847_v35 }
  0x94   : > { %2543 = vmatmul.mubr.msk.bf16.gmra.mrb[28].mxu1 %vm524_vm2, %v2319_v41 }
 0x129   : > { %v2588_v39 = vpop.f32.mrb[0].mxu0 }
 0x12a   : > { %v1360_v57 = vpop.f32.mrb[1].mxu0 }
 0x12b   : > { %v2589_v58 = vpop.f32.mrb[2].mxu0 }
 0x12c   : > { %v1363_v59 = vpop.f32.mrb[3].mxu0 }
 0x12f   : > { %v2516_v61 = vpop.f32.mrb[0].mxu1 }
 0x130   : > { %v2618_v29 = vadd.f32 %v2588_v39, %v2516_v61  ;;  %v876_v30 = vpop.f32.mrb[1].mxu1 }
 0x131   : > { %v2619_v47 = vadd.f32 %v1360_v57, %v876_v30  ;;  %v2517_v49 = vpop.f32.mrb[2].mxu1  ;;  %v2592_v51 = vpop.f32.mrb[4].mxu0 }
 0x132   : > { %v1528_v62 = vadd.f32 %v2618_v29, %v3265_v12  ;;  %v2620_v6 = vadd.f32 %v2589_v58, %v2517_v49  ;;  %v879_v32 = vpop.f32.mrb[3].mxu1  ;;  %v1376_v53 = vpop.f32.mrb[5].mxu0 }
 0x133   : > { %v1526_v54 = vadd.f32 %v2619_v47, %v3265_v12  ;;  %v2621_v55 = vadd.f32 %v1363_v59, %v879_v32  ;;  %v2593_v2 = vpop.f32.mrb[6].mxu0 }
 0x134   : > { %v1588_v9 = vrot.slane %v1528_v62, 1  ;;  %v1529_v34 = vadd.f32 %v2620_v6, %v3265_v12  ;;  %v1379_v38 = vpop.f32.mrb[7].mxu0 }
 0x135   : > { %v1586_v0 = vrot.slane %v1526_v54, 1  ;;  %v1527_v60 = vadd.f32 %v2621_v55, %v3265_v12 }
 0x136   : > { %v1589_v63 = vrot.slane %v1529_v34, 1  ;;  %v1644_v48 = vmax.f32 %v1528_v62, %v1588_v9 }
 0x137   : > { %v1587_v7 = vrot.slane %v1527_v60, 1  ;;  %v2520_v36 = vpop.f32.mrb[4].mxu1  ;;  %v1642_v44 = vmax.f32 %v1526_v54, %v1586_v0 }
 0x138   : > { %v1645_v5 = vmax.f32 %v1529_v34, %v1589_v63  ;;  %v2622_v50 = vadd.f32 %v2592_v51, %v2520_v36  ;;  %v892_v41 = vpop.f32.mrb[5].mxu1 }
 0x139   : > { %v1643_v20 = vmax.f32 %v1527_v60, %v1587_v7  ;;  %v2623_v13 = vadd.f32 %v1376_v53, %v892_v41  ;;  %v2521_v22 = vpop.f32.mrb[6].mxu1  ;;  %v2596_v27 = vpop.f32.mrb[8].mxu0 }
 0x13a   : > { %v3271_v3 = vmax.f32 %v1644_v48, %v1645_v5  ;;  %v1532_v28 = vadd.f32 %v2622_v50, %v3265_v12  ;;  %v2624_v37 = vadd.f32 %v2593_v2, %v2521_v22  ;;  %v895_v45 = vpop.f32.mrb[7].mxu1  ;;  %v1392_v11 = vpop.f32.mrb[9].mxu0 }
 0x13b   : > { %v3274_v8 = vmax.f32 %v1642_v44, %v1643_v20  ;;  %v3276_v56 = vmax.f32 %v1643_v20, %v1644_v48  ;;  %v1530_v31 = vadd.f32 %v2623_v13, %v3265_v12  ;;  %v2625_v33 = vadd.f32 %v1379_v38, %v895_v45  ;;  %v2597_v46 = vpop.f32.mrb[10].mxu0 }
 0x13c   : > { %v2087_v23 = vrot.slane %v3271_v3, 4  ;;  %v1592_v52 = vrot.slane %v1532_v28, 1  ;;  %v1533_v15 = vadd.f32 %v2624_v37, %v3265_v12  ;;  %v1395_v43 = vpop.f32.mrb[11].mxu0  ;;  %v2027_v40 = vrot.slane %v3271_v3, 3 }
 0x13d   : > { %v2084_v1 = vrot.slane %v3274_v8, 6  ;;  %v2085_v16 = vrot.slane %v3276_v56, 5  ;;  %v1590_v21 = vrot.slane %v1530_v31, 1  ;;  %v1531_v17 = vadd.f32 %v2625_v33, %v3265_v12 }
 0x13e   : > { %v1648_v42 = vmax.f32 %v1532_v28, %v1592_v52  ;;  %v1674_v4 = vrot.slane %v1533_v15, 1  ;;  %v2024_v25 = vrot.slane %v3274_v8, 5  ;;  %v2025_v26 = vrot.slane %v3276_v56, 4 }
 0x13f   : > { %v2086_v10 = vsel %vm1743_vm4, %v2085_v16, %v2084_v1  ;;  %v1646_v14 = vmax.f32 %v1530_v31, %v1590_v21  ;;  %v1591_v18 = vrot.slane %v1531_v17, 1  ;;  %v2524_v19 = vpop.f32.mrb[8].mxu1  ;;  %v1800_v24 = vrot.slane %v3274_v8, 1 }
 0x140   : > { %v2088_v35 = vsel %vm1746_vm5, %v2087_v23, %v2086_v10  ;;  %v1682_v39 = vmax.f32 %v1533_v15, %v1674_v4  ;;  %v2626_v57 = vadd.f32 %v2596_v27, %v2524_v19  ;;  %v908_v58 = vpop.f32.mrb[9].mxu1  ;;  %v2026_v59 = vsel %vm1743_vm4, %v2025_v26, %v2024_v25 }
 0x141   : > { %v3291_v61 = vmax.f32 %v1645_v5, %v1646_v14  ;;  %v1647_v29 = vmax.f32 %v1531_v17, %v1591_v18  ;;  %v2627_v30 = vadd.f32 %v1392_v11, %v908_v58  ;;  %v2525_v47 = vpop.f32.mrb[10].mxu1  ;;  %v2600_v49 = vpop.f32.mrb[12].mxu0  ;;  %v2028_v51 = vsel %vm1746_vm5, %v2027_v40, %v2026_v59 }
 0x142   : > { %v3294_v62 = vmax.f32 %v1648_v42, %v1682_v39  ;;  %v1536_v6 = vadd.f32 %v2626_v57, %v3265_v12  ;;  %v2628_v32 = vadd.f32 %v2597_v46, %v2525_v47  ;;  %v911_v53 = vpop.f32.mrb[11].mxu1  ;;  %v1408_v54 = vpop.f32.mrb[13].mxu0  ;;  %v1801_v55 = vsel %vm1743_vm4, %v3276_v56, %v1800_v24 }
 0x143   : > { %v2089_v2 = vrot.slane %v3291_v61, 3  ;;  %v3300_v9 = vmax.f32 %v1646_v14, %v1647_v29  ;;  %v3302_v34 = vmax.f32 %v1647_v29, %v1648_v42  ;;  %v1534_v38 = vadd.f32 %v2627_v30, %v3265_v12  ;;  %v2601_v0 = vpop.f32.mrb[14].mxu0 }
 0x144   : > { %v1595_v60 = vrot.slane %v1536_v6, 1  ;;  %v1537_v63 = vadd.f32 %v2628_v32, %v3265_v12  ;;  %v2629_v7 = vadd.f32 %v1395_v43, %v911_v53  ;;  %v1411_v36 = vpop.f32.mrb[15].mxu0  ;;  %v2029_v48 = vrot.slane %v3291_v61, 2 }
 0x145   : > { %v2090_v5 = vsel %vm1749_vm6, %v2089_v2, %v2088_v35  ;;  %v2091_v50 = vrot.slane %v3300_v9, 2  ;;  %v2093_v41 = vrot.slane %v3302_v34, 1  ;;  %v1593_v44 = vrot.slane %v1534_v38, 1 }
 0x146   : > { %v1651_v20 = vmax.f32 %v1536_v6, %v1595_v60  ;;  %v1596_v13 = vrot.slane %v1537_v63, 1  ;;  %v1535_v22 = vadd.f32 %v2629_v7, %v3265_v12  ;;  %v2030_v27 = vsel %vm1749_vm6, %v2029_v48, %v2028_v51 }
 0x147   : > { %v2092_v28 = vsel %vm1752_vm7, %v2091_v50, %v2090_v5  ;;  %v1649_v37 = vmax.f32 %v1534_v38, %v1593_v44  ;;  %v2528_v45 = vpop.f32.mrb[12].mxu1  ;;  %v2031_v11 = vrot.slane %v3300_v9, 1  ;;  %v2034_v31 = vrot.slane %v3294_v62, 7 }
 0x148   : > { %v2094_v33 = vsel %vm1755_vm8, %v2093_v41, %v2092_v28  ;;  %v1652_v46 = vmax.f32 %v1537_v63, %v1596_v13  ;;  %v1594_v23 = vrot.slane %v1535_v22, 1  ;;  %v2630_v52 = vadd.f32 %v2600_v49, %v2528_v45  ;;  %v924_v15 = vpop.f32.mrb[13].mxu1 }
 0x149   : > { %v2095_v43 = vsel %vm1758_vm9, %v3294_v62, %v2094_v33  ;;  %v2631_v40 = vadd.f32 %v1408_v54, %v924_v15  ;;  %v2529_v1 = vpop.f32.mrb[14].mxu1  ;;  %v2032_v16 = vsel %vm1752_vm7, %v2031_v11, %v2030_v27  ;;  %v1802_v21 = vrot.slane %v3271_v3, 7  ;;  %v2604_v17 = vpop.f32.mrb[16].mxu0 }
 0x14a   : > { %2153 = vst.msk [vmem:[%s3316_s14 + $0x18] sm:$0x7f] %vm2152_vm10, %v2095_v43  ;;  %v3328_v42 = vmax.f32 %v1651_v20, %v1652_v46  ;;  %v1650_v4 = vmax.f32 %v1535_v22, %v1594_v23  ;;  %v1540_v25 = vadd.f32 %v2630_v52, %v3265_v12  ;;  %v2632_v26 = vadd.f32 %v2601_v0, %v2529_v1  ;;  %v927_v10 = vpop.f32.mrb[15].mxu1  ;;  %v1424_v14 = vpop.f32.mrb[17].mxu0 }
 0x14b   : > { %v1538_v18 = vadd.f32 %v2631_v40, %v3265_v12  ;;  %v2033_v19 = vsel %vm1755_vm8, %v3302_v34, %v2032_v16  ;;  %v1803_v24 = vsel %vm1746_vm5, %v1802_v21, %v1801_v55  ;;  %v1804_v35 = vrot.slane %v3291_v61, 6  ;;  %v2605_v39 = vpop.f32.mrb[18].mxu0 }
 0x14c   : > { %v2099_v57 = vrot.slane %v3328_v42, 4  ;;  %v3337_v58 = vmax.f32 %v1649_v37, %v1650_v4  ;;  %v3339_v59 = vmax.f32 %v1650_v4, %v1651_v20  ;;  %v1599_v29 = vrot.slane %v1540_v25, 1  ;;  %v1427_v30 = vpop.f32.mrb[19].mxu0 }
 0x14d   : > { %v1597_v47 = vrot.slane %v1538_v18, 1  ;;  %v1541_v49 = vadd.f32 %v2632_v26, %v3265_v12  ;;  %v2035_v51 = vsel %vm1758_vm9, %v2034_v31, %v2033_v19  ;;  %v1805_v6 = vsel %vm1749_vm6, %v1804_v35, %v1803_v24 }
 0x14e   : > { %v2096_v32 = vrot.slane %v3337_v58, 6  ;;  %v2097_v53 = vrot.slane %v3339_v59, 5  ;;  %v1655_v54 = vmax.f32 %v1540_v25, %v1599_v29  ;;  %2072 = vrot.lane.b32.xlu1 %v2035_v51, %s2760_s15  ;;  %v1806_v55 = vrot.slane %v3300_v9, 5 }
 0x14f   : > { %v1653_v2 = vmax.f32 %v1538_v18, %v1597_v47  ;;  %v1675_v38 = vrot.slane %v1541_v49, 1  ;;  %v1808_v0 = vrot.slane %v3302_v34, 4  ;;  %v1810_v60 = vrot.slane %v3294_v62, 3  ;;  %v2532_v63 = vpop.f32.mrb[16].mxu1 }
 0x150   : > { %v2098_v7 = vsel %vm1743_vm4, %v2097_v53, %v2096_v32  ;;  %v1807_v48 = vsel %vm1752_vm7, %v1806_v55, %v1805_v6  ;;  %v2633_v5 = vadd.f32 %v1411_v36, %v927_v10  ;;  %v1912_v50 = vrot.slane %v3274_v8, 3  ;;  %v940_v41 = vpop.f32.mrb[17].mxu1 }
 0x151   : > { %v3353_v44 = vmax.f32 %v1652_v46, %v1653_v2  ;;  %v2100_v20 = vsel %vm1746_vm5, %v2099_v57, %v2098_v7  ;;  %v1683_v13 = vmax.f32 %v1541_v49, %v1675_v38  ;;  %v1809_v22 = vsel %vm1755_vm8, %v1808_v0, %v1807_v48  ;;  %v2533_v27 = vpop.f32.mrb[18].mxu1  ;;  %v2608_v28 = vpop.f32.mrb[20].mxu0 }
 0x152   : > { %v1811_v37 = vsel %vm1758_vm9, %v1810_v60, %v1809_v22  ;;  %v1539_v45 = vadd.f32 %v2633_v5, %v3265_v12  ;;  %v1913_v11 = vrot.slane %v3276_v56, 2  ;;  %v1915_v36 = vrot.slane %v3271_v3, 1  ;;  %v943_v31 = vpop.f32.mrb[19].mxu1  ;;  %v1440_v33 = vpop.f32.mrb[21].mxu0 }
 0x153   : > { %v2101_v46 = vrot.slane %v3353_v44, 3  ;;  %v3362_v23 = vmax.f32 %v1655_v54, %v1683_v13  ;;  %1848 = vrot.lane.b32.xlu0 %v1811_v37, %s2760_s15  ;;  %v1918_v52 = vrot.slane %v3300_v9, 7  ;;  %v1920_v15 = vrot.slane %v3302_v34, 6  ;;  %v2609_v43 = vpop.f32.mrb[22].mxu0 }
 0x154   : > { %v1598_v40 = vrot.slane %v1539_v45, 1  ;;  %v1914_v1 = vsel %vm1743_vm4, %v1913_v11, %v1912_v50  ;;  %v1922_v16 = vrot.slane %v3294_v62, 5  ;;  %v2634_v21 = vadd.f32 %v2604_v17, %v2532_v63  ;;  %v3369_v4 = vpop.f32.mrb[23].mxu0 }
 0x155   : > { %v2102_v25 = vsel %vm1749_vm6, %v2101_v46, %v2100_v20  ;;  %v1916_v26 = vsel %vm1746_vm5, %v1915_v36, %v1914_v1  ;;  %v2635_v10 = vadd.f32 %v1424_v14, %v940_v41  ;;  %v2636_v18 = vadd.f32 %v2605_v39, %v2533_v27 }
 0x156   : > { %v1654_v19 = vmax.f32 %v1539_v45, %v1598_v40  ;;  %v1917_v24 = vsel %vm1749_vm6, %v3291_v61, %v1916_v26  ;;  %v1544_v35 = vadd.f32 %v2634_v21, %v3265_v12  ;;  %v2637_v57 = vadd.f32 %v1427_v30, %v943_v31 }
 0x157   : > { %v1919_v29 = vsel %vm1752_vm7, %v1918_v52, %v1917_v24  ;;  %v1542_v47 = vadd.f32 %v2635_v10, %v3265_v12  ;;  %v1545_v17 = vadd.f32 %v2636_v18, %v3265_v12  ;;  %v2536_v49 = vpop.f32.mrb[20].mxu1  ;;  %v1924_v51 = vrot.slane %v3337_v58, 3 }
 0x158   : > { %v3380_v6 = vmax.f32 %v1653_v2, %v1654_v19  ;;  %v3382_v14 = vmax.f32 %v1654_v19, %v1655_v54  ;;  %v1921_v39 = vsel %vm1755_vm8, %v1920_v15, %v1919_v29  ;;  %v1602_v32 = vrot.slane %v1544_v35, 1  ;;  %v956_v53 = vpop.f32.mrb[21].mxu1 }
 0x159   : > { %v1923_v55 = vsel %vm1758_vm9, %v1922_v16, %v1921_v39  ;;  %v1600_v30 = vrot.slane %v1542_v47, 1  ;;  %v1603_v38 = vrot.slane %v1545_v17, 1  ;;  %v1543_v0 = vadd.f32 %v2637_v57, %v3265_v12  ;;  %v2537_v60 = vpop.f32.mrb[22].mxu1  ;;  %v3387_v63 = vpop.f32.mrb[24].mxu0 }
 0x15a   : > { %v2103_v7 = vrot.slane %v3380_v6, 2  ;;  %v2105_v2 = vrot.slane %v3382_v14, 1  ;;  %1960 = vrot.lane.b32.xlu0 %v1923_v55, %s2760_s15  ;;  %v1658_v54 = vmax.f32 %v1544_v35, %v1602_v32  ;;  %v2638_v48 = vadd.f32 %v2608_v28, %v2536_v49  ;;  %v3392_v5 = vpop.f32.mrb[23].mxu1  ;;  %v3394_v50 = vpop.f32.mrb[25].mxu0 }
 0x15b   : > { %v1656_v41 = vmax.f32 %v1542_v47, %v1600_v30  ;;  %v1659_v20 = vmax.f32 %v1545_v17, %v1603_v38  ;;  %v1601_v13 = vrot.slane %v1543_v0, 1  ;;  %v2639_v22 = vadd.f32 %v1440_v33, %v956_v53  ;;  %v3396_v27 = vpop.f32.mrb[26].mxu0 }
 0x15c   : > { %v2104_v37 = vsel %vm1752_vm7, %v2103_v7, %v2102_v25  ;;  %v1548_v45 = vadd.f32 %v2638_v48, %v3265_v12  ;;  %v2640_v11 = vadd.f32 %v2609_v43, %v2537_v60  ;;  %v1925_v36 = vrot.slane %v3339_v59, 2  ;;  %v3401_v31 = vpop.f32.mrb[27].mxu0 }
 0x15d   : > { %v2106_v28 = vsel %vm1755_vm8, %v2105_v2, %v2104_v37  ;;  %v3404_v46 = vmax.f32 %v1658_v54, %v1659_v20  ;;  %v1657_v52 = vmax.f32 %v1543_v0, %v1601_v13  ;;  %v1546_v15 = vadd.f32 %v2639_v22, %v3265_v12 }
 0x15e   : > { %v2107_v33 = vsel %vm1758_vm9, %v3362_v23, %v2106_v28  ;;  %v1606_v40 = vrot.slane %v1548_v45, 1  ;;  %v1549_v1 = vadd.f32 %v2640_v11, %v3265_v12  ;;  %v1926_v16 = vsel %vm1743_vm4, %v1925_v36, %v1924_v51 }
 0x15f   : > { %2157 = vst.msk [vmem:[%s3316_s14 + $0x38] sm:$0x7f] %vm2152_vm10, %v2107_v33  ;;  %v2111_v43 = vrot.slane %v3404_v46, 4  ;;  %v3414_v21 = vmax.f32 %v1656_v41, %v1657_v52  ;;  %v3416_v25 = vmax.f32 %v1657_v52, %v1658_v54  ;;  %v1604_v26 = vrot.slane %v1546_v15, 1  ;;  %v2540_v10 = vpop.f32.mrb[24].mxu1 }
 0x160   : > { %v3418_v18 = vmax.f32 %v1548_v45, %v1606_v40  ;;  %v1676_v19 = vrot.slane %v1549_v1, 1  ;;  %v1927_v24 = vrot.slane %v3328_v42, 1  ;;  %v1930_v35 = vrot.slane %v3380_v6, 7  ;;  %v972_v57 = vpop.f32.mrb[25].mxu1 }
 0x161   : > { %v2108_v29 = vrot.slane %v3414_v21, 6  ;;  %v2109_v47 = vrot.slane %v3416_v25, 5  ;;  %v3424_v17 = vmax.f32 %v1546_v15, %v1604_v26  ;;  %v1932_v49 = vrot.slane %v3382_v14, 6  ;;  %v2541_v51 = vpop.f32.mrb[26].mxu1  ;;  %v2616_v39 = vpop.f32.mrb[28].mxu0 }
 0x162   : > { %v1684_v32 = vmax.f32 %v1549_v1, %v1676_v19  ;;  %v1928_v53 = vsel %vm1746_vm5, %v1927_v24, %v1926_v16  ;;  %v1934_v55 = vrot.slane %v3362_v23, 5  ;;  %v1812_v30 = vrot.slane %v3337_v58, 1  ;;  %v975_v38 = vpop.f32.mrb[27].mxu1  ;;  %v3430_v0 = vpop.f32.mrb[29].mxu0 }
 0x163   : > { %v2110_v60 = vsel %vm1743_vm4, %v2109_v47, %v2108_v29  ;;  %v3434_v7 = vmax.f32 %v1659_v20, %v3424_v17  ;;  %v1929_v2 = vsel %vm1749_vm6, %v3353_v44, %v1928_v53  ;;  %v1814_v54 = vrot.slane %v3328_v42, 7  ;;  %v3439_v48 = vpop.f32.mrb[30].mxu0 }
 0x164   : > { %v2112_v41 = vsel %vm1746_vm5, %v2111_v43, %v2110_v60  ;;  %v3443_v13 = vmax.f32 %v3418_v18, %v1684_v32  ;;  %v1931_v22 = vsel %vm1752_vm7, %v1930_v35, %v1929_v2  ;;  %v1813_v37 = vsel %vm1743_vm4, %v3339_v59, %v1812_v30  ;;  %v3448_v45 = vpop.f32.mrb[31].mxu0 }
 0x165   : > { %v2113_v20 = vrot.slane %v3434_v7, 3  ;;  %v1933_v11 = vsel %vm1755_vm8, %v1932_v49, %v1931_v22  ;;  %v1815_v36 = vsel %vm1746_vm5, %v1814_v54, %v1813_v37  ;;  %v1816_v28 = vrot.slane %v3353_v44, 6 }
 0x166   : > { %v1935_v52 = vsel %vm1758_vm9, %v1934_v55, %v1933_v11  ;;  %v1818_v15 = vrot.slane %v3380_v6, 5  ;;  %v1820_v33 = vrot.slane %v3382_v14, 4  ;;  %v1822_v40 = vrot.slane %v3362_v23, 3 }
 0x167   : > { %v2114_v1 = vsel %vm1749_vm6, %v2113_v20, %v2112_v41  ;;  %1962 = vrot.lane.b32.xlu0 %v1935_v52, %s2760_s15  ;;  %v1817_v16 = vsel %vm1749_vm6, %v1816_v28, %v1815_v36  ;;  %v2641_v43 = vadd.f32 %v3369_v4, %v3392_v5  ;;  %v2036_v26 = vrot.slane %v3337_v58, 5  ;;  %v2544_v19 = vpop.f32.mrb[28].mxu1 }
 0x168   : > { %v1819_v24 = vsel %vm1752_vm7, %v1818_v15, %v1817_v16  ;;  %v2037_v35 = vrot.slane %v3339_v59, 4  ;;  %v2039_v29 = vrot.slane %v3328_v42, 3  ;;  %v2041_v47 = vrot.slane %v3353_v44, 2  ;;  %v988_v49 = vpop.f32.mrb[29].mxu1 }
 0x169   : > { %v1821_v32 = vsel %vm1755_vm8, %v1820_v33, %v1819_v24  ;;  %v1547_v53 = vadd.f32 %v2641_v43, %v3265_v12  ;;  %v2043_v55 = vrot.slane %v3380_v6, 1  ;;  %v2046_v4 = vrot.slane %v3362_v23, 7  ;;  %v2545_v5 = vpop.f32.mrb[30].mxu1 }
 0x16a   : > { %v1823_v30 = vsel %vm1758_vm9, %v1822_v40, %v1821_v32  ;;  %v2038_v60 = vsel %vm1743_vm4, %v2037_v35, %v2036_v26  ;;  %v2642_v2 = vadd.f32 %v3387_v63, %v2540_v10  ;;  %v2643_v54 = vadd.f32 %v3394_v50, %v972_v57  ;;  %v3476_v41 = vpop.f32.mrb[31].mxu1 }
 0x16b   : > { %1850 = vrot.lane.b32.xlu1 %v1823_v30, %s2760_s15  ;;  %v1605_v22 = vrot.slane %v1547_v53, 1  ;;  %v2040_v37 = vsel %vm1746_vm5, %v2039_v29, %v2038_v60  ;;  %v2644_v20 = vadd.f32 %v3396_v27, %v2541_v51  ;;  %v2645_v11 = vadd.f32 %v3401_v31, %v975_v38 }
 0x16c   : > { %v2042_v36 = vsel %vm1749_vm6, %v2041_v47, %v2040_v37  ;;  %v1552_v28 = vadd.f32 %v2642_v2, %v3265_v12  ;;  %v1550_v52 = vadd.f32 %v2643_v54, %v3265_v12  ;;  %v2646_v63 = vadd.f32 %v2616_v39, %v2544_v19 }
 0x16d   : > { %v1661_v10 = vmax.f32 %v1547_v53, %v1605_v22  ;;  %v2044_v50 = vsel %vm1752_vm7, %v2043_v55, %v2042_v36  ;;  %v1553_v57 = vadd.f32 %v2644_v20, %v3265_v12  ;;  %v1551_v15 = vadd.f32 %v2645_v11, %v3265_v12 }
 0x16e   : > { %v2045_v33 = vsel %vm1755_vm8, %v3382_v14, %v2044_v50  ;;  %v1609_v27 = vrot.slane %v1552_v28, 1  ;;  %v1607_v51 = vrot.slane %v1550_v52, 1  ;;  %v1556_v31 = vadd.f32 %v2646_v63, %v3265_v12 }
 0x16f   : > { %v3492_v38 = vmax.f32 %v3424_v17, %v1661_v10  ;;  %v3495_v40 = vmax.f32 %v1661_v10, %v3418_v18  ;;  %v2047_v39 = vsel %vm1758_vm9, %v2046_v4, %v2045_v33  ;;  %v1610_v16 = vrot.slane %v1553_v57, 1 }
 0x170   : > { %2074 = vrot.lane.b32.xlu1 %v2047_v39, %s2760_s15  ;;  %v1665_v43 = vmax.f32 %v1552_v28, %v1609_v27  ;;  %v1663_v26 = vmax.f32 %v1550_v52, %v1607_v51  ;;  %v1608_v19 = vrot.slane %v1551_v15, 1  ;;  %v1613_v24 = vrot.slane %v1556_v31, 1 }
 0x171   : > { %v2115_v35 = vrot.slane %v3492_v38, 2  ;;  %v2117_v29 = vrot.slane %v3495_v40, 1  ;;  %v1666_v47 = vmax.f32 %v1553_v57, %v1610_v16  ;;  %v2647_v17 = vadd.f32 %v3430_v0, %v988_v49 }
 0x172   : > { %v1664_v32 = vmax.f32 %v1551_v15, %v1608_v19  ;;  %v3502_v18 = vmax.f32 %v1556_v31, %v1613_v24  ;;  %v2648_v53 = vadd.f32 %v3439_v48, %v2545_v5  ;;  %v1936_v55 = vrot.slane %v3414_v21, 3 }
 0x173   : > { %v2116_v4 = vsel %vm1752_vm7, %v2115_v35, %v2114_v1  ;;  %v3507_v30 = vmax.f32 %v1665_v43, %v1666_v47  ;;  %v1554_v60 = vadd.f32 %v2647_v17, %v3265_v12  ;;  %v1937_v2 = vrot.slane %v3416_v25, 2 }
 0x174   : > { %v2118_v54 = vsel %vm1755_vm8, %v2117_v29, %v2116_v4  ;;  %v3512_v22 = vmax.f32 %v1663_v26, %v1664_v32  ;;  %v3514_v0 = vmax.f32 %v1664_v32, %v1665_v43  ;;  %v1557_v49 = vadd.f32 %v2648_v53, %v3265_v12 }
 0x175   : > { %v2119_v48 = vsel %vm1758_vm9, %v3443_v13, %v2118_v54  ;;  %v2123_v5 = vrot.slane %v3507_v30, 4  ;;  %v1611_v1 = vrot.slane %v1554_v60, 1  ;;  %v1938_v37 = vsel %vm1743_vm4, %v1937_v2, %v1936_v55 }
 0x176   : > { %2161 = vst.msk [vmem:[%s3316_s14 + $0x58] sm:$0x7f] %vm2152_vm10, %v2119_v48  ;;  %v2120_v20 = vrot.slane %v3512_v22, 6  ;;  %v2121_v11 = vrot.slane %v3514_v0, 5  ;;  %v1677_v36 = vrot.slane %v1557_v49, 1  ;;  %v1939_v28 = vrot.slane %v3404_v46, 1 }
 0x177   : > { %v1667_v52 = vmax.f32 %v1554_v60, %v1611_v1  ;;  %v1942_v63 = vrot.slane %v3492_v38, 7  ;;  %v1944_v10 = vrot.slane %v3495_v40, 6  ;;  %v1946_v50 = vrot.slane %v3443_v13, 5 }
 0x178   : > { %v2122_v57 = vsel %vm1743_vm4, %v2121_v11, %v2120_v20  ;;  %v1685_v15 = vmax.f32 %v1557_v49, %v1677_v36  ;;  %v1940_v33 = vsel %vm1746_vm5, %v1939_v28, %v1938_v37  ;;  %v1824_v27 = vrot.slane %v3414_v21, 1 }
 0x179   : > { %v3532_v51 = vmax.f32 %v1666_v47, %v1667_v52  ;;  %v2124_v31 = vsel %vm1746_vm5, %v2123_v5, %v2122_v57  ;;  %v1941_v39 = vsel %vm1749_vm6, %v3434_v7, %v1940_v33  ;;  %v1826_v16 = vrot.slane %v3404_v46, 7 }
 0x17a   : > { %v3539_v43 = vmax.f32 %v3502_v18, %v1685_v15  ;;  %v1943_v26 = vsel %vm1752_vm7, %v1942_v63, %v1941_v39  ;;  %v1825_v19 = vsel %vm1743_vm4, %v3416_v25, %v1824_v27  ;;  %v1828_v24 = vrot.slane %v3434_v7, 6 }
 0x17b   : > { %v2125_v35 = vrot.slane %v3532_v51, 3  ;;  %v1945_v29 = vsel %vm1755_vm8, %v1944_v10, %v1943_v26  ;;  %v1827_v47 = vsel %vm1746_vm5, %v1826_v16, %v1825_v19  ;;  %v1830_v17 = vrot.slane %v3492_v38, 5 }
 0x17c   : > { %v1947_v32 = vsel %vm1758_vm9, %v1946_v50, %v1945_v29  ;;  %v1829_v53 = vsel %vm1749_vm6, %v1828_v24, %v1827_v47  ;;  %v1832_v55 = vrot.slane %v3495_v40, 4  ;;  %v1834_v4 = vrot.slane %v3443_v13, 3 }
 0x17d   : > { %v2126_v60 = vsel %vm1749_vm6, %v2125_v35, %v2124_v31  ;;  %1964 = vrot.lane.b32.xlu1 %v1947_v32, %s2760_s15  ;;  %v1831_v2 = vsel %vm1752_vm7, %v1830_v17, %v1829_v53  ;;  %v2649_v54 = vadd.f32 %v3448_v45, %v3476_v41  ;;  %v2048_v49 = vrot.slane %v3414_v21, 5 }
 0x17e   : > { %v1833_v48 = vsel %vm1755_vm8, %v1832_v55, %v1831_v2  ;;  %v2049_v5 = vrot.slane %v3416_v25, 4  ;;  %v2051_v1 = vrot.slane %v3404_v46, 3  ;;  %v2053_v37 = vrot.slane %v3434_v7, 2 }
 0x17f   : > { %v1835_v20 = vsel %vm1758_vm9, %v1834_v4, %v1833_v48  ;;  %v1555_v11 = vadd.f32 %v2649_v54, %v3265_v12  ;;  %v2055_v36 = vrot.slane %v3492_v38, 1  ;;  %v2058_v28 = vrot.slane %v3443_v13, 7 }
 0x180   : > { %1852 = vrot.lane.b32.xlu0 %v1835_v20, %s2760_s15  ;;  %v2050_v45 = vsel %vm1743_vm4, %v2049_v5, %v2048_v49  ;;  %v1948_v41 = vrot.slane %v3512_v22, 3  ;;  %v1949_v63 = vrot.slane %v3514_v0, 2  ;;  %v1951_v10 = vrot.slane %v3507_v30, 1 }
 0x181   : > { %v1612_v50 = vrot.slane %v1555_v11, 1  ;;  %v2052_v57 = vsel %vm1746_vm5, %v2051_v1, %v2050_v45  ;;  %v1958_v15 = vrot.slane %v3539_v43, 5  ;;  %v1836_v12 = vrot.slane %v3512_v22, 1 }
 0x182   : > { %v2054_v33 = vsel %vm1749_vm6, %v2053_v37, %v2052_v57  ;;  %v1950_v27 = vsel %vm1743_vm4, %v1949_v63, %v1948_v41  ;;  %v1838_v31 = vrot.slane %v3507_v30, 7  ;;  %v1840_v39 = vrot.slane %v3532_v51, 6 }
 0x183   : > { %v1668_v16 = vmax.f32 %v1555_v11, %v1612_v50  ;;  %v2056_v26 = vsel %vm1752_vm7, %v2055_v36, %v2054_v33  ;;  %v1952_v19 = vsel %vm1746_vm5, %v1951_v10, %v1950_v27  ;;  %v1837_v24 = vsel %vm1743_vm4, %v3514_v0, %v1836_v12 }
 0x184   : > { %v2057_v35 = vsel %vm1755_vm8, %v3495_v40, %v2056_v26  ;;  %v1953_v29 = vsel %vm1749_vm6, %v3532_v51, %v1952_v19  ;;  %v1839_v47 = vsel %vm1746_vm5, %v1838_v31, %v1837_v24  ;;  %v1846_v17 = vrot.slane %v3539_v43, 3 }
 0x185   : > { %v3589_v32 = vmax.f32 %v1667_v52, %v1668_v16  ;;  %v3592_v53 = vmax.f32 %v1668_v16, %v3502_v18  ;;  %v2059_v55 = vsel %vm1758_vm9, %v2058_v28, %v2057_v35  ;;  %v1841_v4 = vsel %vm1749_vm6, %v1840_v39, %v1839_v47 }
 0x186   : > { %2076 = vrot.lane.b32.xlu0 %v2059_v55, %s2760_s15  ;;  %v2060_v2 = vrot.slane %v3512_v22, 5  ;;  %v2061_v54 = vrot.slane %v3514_v0, 4  ;;  %v2063_v49 = vrot.slane %v3507_v30, 3  ;;  %v2065_v48 = vrot.slane %v3532_v51, 2 }
 0x187   : > { %v2127_v52 = vrot.slane %v3589_v32, 2  ;;  %v2129_v5 = vrot.slane %v3592_v53, 1  ;;  %v1954_v18 = vrot.slane %v3589_v32, 7  ;;  %v1956_v1 = vrot.slane %v3592_v53, 6 }
 0x188   : > { %v1842_v37 = vrot.slane %v3589_v32, 5  ;;  %v1844_v20 = vrot.slane %v3592_v53, 4  ;;  %v2062_v11 = vsel %vm1743_vm4, %v2061_v54, %v2060_v2  ;;  %v2067_v36 = vrot.slane %v3589_v32, 1 }
 0x189   : > { %v2128_v28 = vsel %vm1752_vm7, %v2127_v52, %v2126_v60  ;;  %v1955_v45 = vsel %vm1752_vm7, %v1954_v18, %v1953_v29  ;;  %v2064_v41 = vsel %vm1746_vm5, %v2063_v49, %v2062_v11  ;;  %v2070_v63 = vrot.slane %v3539_v43, 7 }
 0x18a   : > { %v2130_v10 = vsel %vm1755_vm8, %v2129_v5, %v2128_v28  ;;  %v1957_v50 = vsel %vm1755_vm8, %v1956_v1, %v1955_v45  ;;  %v1843_v57 = vsel %vm1752_vm7, %v1842_v37, %v1841_v4  ;;  %v2066_v12 = vsel %vm1749_vm6, %v2065_v48, %v2064_v41 }
 0x18b   : > { %v2131_v33 = vsel %vm1758_vm9, %v3539_v43, %v2130_v10  ;;  %v1959_v27 = vsel %vm1758_vm9, %v1958_v15, %v1957_v50  ;;  %v1845_v60 = vsel %vm1755_vm8, %v1844_v20, %v1843_v57  ;;  %v2068_v31 = vsel %vm1752_vm7, %v2067_v36, %v2066_v12 }
 0x18c   : > { %2165 = vst.msk [vmem:[%s3316_s14 + $0x78] sm:$0x7f] %vm2152_vm10, %v2131_v33  ;;  %1966 = vrot.lane.b32.xlu0 %v1959_v27, %s2760_s15  ;;  %v1847_v39 = vsel %vm1758_vm9, %v1846_v17, %v1845_v60  ;;  %v2069_v16 = vsel %vm1755_vm8, %v3592_v53, %v2068_v31  ;;  %v1884_v15 = vrot.slane %v3414_v21, 2  ;;  %v1885_v19 = vrot.slane %v3416_v25, 1 }
 0x18d   : > { %1854 = vrot.lane.b32.xlu1 %v1847_v39, %s2760_s15  ;;  %v2071_v26 = vsel %vm1758_vm9, %v2070_v63, %v2069_v16  ;;  %v1888_v24 = vrot.slane %v3434_v7, 7  ;;  %v1892_v29 = vrot.slane %v3495_v40, 5  ;;  %v1890_v47 = vrot.slane %v3492_v38, 6 }
 0x18e   : > { %v1886_v35 = vsel %vm1743_vm4, %v1885_v19, %v1884_v15  ;;  %v1772_v55 = vrot.slane %v3416_v25, 7  ;;  %v1894_v2 = vrot.slane %v3443_v13, 4  ;;  %v1774_v54 = vrot.slane %v3404_v46, 6 }
 0x18f   : > { %v1887_v17 = vsel %vm1746_vm5, %v3404_v46, %v1886_v35  ;;  %v1776_v49 = vrot.slane %v3434_v7, 5  ;;  %v1780_v5 = vrot.slane %v3495_v40, 3  ;;  %v1778_v18 = vrot.slane %v3492_v38, 4 }
 0x190   : > { %v1889_v4 = vsel %vm1749_vm6, %v1888_v24, %v1887_v17  ;;  %v1773_v52 = vsel %vm1743_vm4, %v1772_v55, %v3414_v21  ;;  %v1996_v20 = vrot.slane %v3414_v21, 4  ;;  %v1997_v11 = vrot.slane %v3416_v25, 3 }
 0x191   : > { %2078 = vrot.lane.b32.xlu1 %v2071_v26, %s2760_s15  ;;  %v1891_v48 = vsel %vm1752_vm7, %v1890_v47, %v1889_v4  ;;  %v1775_v37 = vsel %vm1746_vm5, %v1774_v54, %v1773_v52  ;;  %v1999_v45 = vrot.slane %v3404_v46, 2  ;;  %v2001_v41 = vrot.slane %v3434_v7, 1 }
 0x192   : > { %v1893_v1 = vsel %vm1755_vm8, %v1892_v29, %v1891_v48  ;;  %v1777_v28 = vsel %vm1749_vm6, %v1776_v49, %v1775_v37  ;;  %v1782_v63 = vrot.slane %v3443_v13, 2  ;;  %v1998_v50 = vsel %vm1743_vm4, %v1997_v11, %v1996_v20 }
 0x193   : > { %v3654_v36 = vsel %vm1758_vm9, %v1894_v2, %v1893_v1  ;;  %v1779_v10 = vsel %vm1752_vm7, %v1778_v18, %v1777_v28  ;;  %v2004_v57 = vrot.slane %v3495_v40, 7  ;;  %v2000_v25 = vsel %vm1746_vm5, %v1999_v45, %v1998_v50 }
 0x194   : > { %v1781_v21 = vsel %vm1755_vm8, %v1780_v5, %v1779_v10  ;;  %v1896_v12 = vrot.slane %v3512_v22, 2  ;;  %v1897_v33 = vrot.slane %v3514_v0, 1  ;;  %v2002_v7 = vsel %vm1749_vm6, %v2001_v41, %v2000_v25 }
 0x195   : > { %v3668_v46 = vsel %vm1758_vm9, %v1782_v63, %v1781_v21  ;;  %v2006_v27 = vrot.slane %v3443_v13, 6  ;;  %v1900_v60 = vrot.slane %v3532_v51, 7  ;;  %v2003_v40 = vsel %vm1752_vm7, %v3492_v38, %v2002_v7 }
 0x196   : > { %v1898_v31 = vsel %vm1743_vm4, %v1897_v33, %v1896_v12  ;;  %v1904_v39 = vrot.slane %v3592_v53, 5  ;;  %v1902_v16 = vrot.slane %v3589_v32, 6  ;;  %v2005_v26 = vsel %vm1755_vm8, %v2004_v57, %v2003_v40 }
 0x197   : > { %v1899_v15 = vsel %vm1746_vm5, %v3507_v30, %v1898_v31  ;;  %v1906_v19 = vrot.slane %v3539_v43, 4  ;;  %v1784_v13 = vrot.slane %v3514_v0, 7  ;;  %v3684_v24 = vsel %vm1758_vm9, %v2006_v27, %v2005_v26 }
 0x198   : > { %v1901_v38 = vsel %vm1749_vm6, %v1900_v60, %v1899_v15  ;;  %v1786_v35 = vrot.slane %v3507_v30, 6  ;;  %v1788_v29 = vrot.slane %v3532_v51, 5  ;;  %v1792_v55 = vrot.slane %v3592_v53, 3 }
 0x199   : > { %v1903_v47 = vsel %vm1752_vm7, %v1902_v16, %v1901_v38  ;;  %v1785_v17 = vsel %vm1743_vm4, %v1784_v13, %v3512_v22  ;;  %v1790_v4 = vrot.slane %v3589_v32, 4  ;;  %v2008_v49 = vrot.slane %v3512_v22, 4 }
 0x19a   : > { %v1905_v2 = vsel %vm1755_vm8, %v1904_v39, %v1903_v47  ;;  %v1787_v54 = vsel %vm1746_vm5, %v1786_v35, %v1785_v17  ;;  %v2009_v48 = vrot.slane %v3514_v0, 3  ;;  %v2011_v18 = vrot.slane %v3507_v30, 2 }
 0x19b   : > { %v3699_v52 = vsel %vm1758_vm9, %v1906_v19, %v1905_v2  ;;  %v1789_v5 = vsel %vm1749_vm6, %v1788_v29, %v1787_v54  ;;  %v2013_v1 = vrot.slane %v3532_v51, 1  ;;  %v1794_v37 = vrot.slane %v3539_v43, 2 }
 0x19c   : > { %v1791_v20 = vsel %vm1752_vm7, %v1790_v4, %v1789_v5  ;;  %v2010_v11 = vsel %vm1743_vm4, %v2009_v48, %v2008_v49  ;;  %v2016_v28 = vrot.slane %v3592_v53, 7  ;;  %v1972_v22 = vrot.slane %v3274_v8, 4 }
 0x19d   : > { %v1973_v0 = vrot.slane %v3276_v56, 3  ;;  %v1793_v45 = vsel %vm1755_vm8, %v1792_v55, %v1791_v20  ;;  %v2012_v41 = vsel %vm1746_vm5, %v2011_v18, %v2010_v11  ;;  %v2018_v10 = vrot.slane %v3539_v43, 6 }
 0x19e   : > { %v3713_v30 = vsel %vm1758_vm9, %v1794_v37, %v1793_v45  ;;  %v2014_v51 = vsel %vm1749_vm6, %v2013_v1, %v2012_v41  ;;  %v1977_v57 = vrot.slane %v3291_v61, 1  ;;  %v1975_v25 = vrot.slane %v3271_v3, 2 }
 0x19f   : > { %v2015_v63 = vsel %vm1752_vm7, %v3589_v32, %v2014_v51  ;;  %v1974_v50 = vsel %vm1743_vm4, %v1973_v0, %v1972_v22  ;;  %v1742_v12 = vrot.slane %v3276_v56, 7  ;;  %v1748_v32 = vrot.slane %v3291_v61, 5 }
 0x1a0   : > { %v2017_v53 = vsel %vm1755_vm8, %v2016_v28, %v2015_v63  ;;  %v1976_v33 = vsel %vm1746_vm5, %v1975_v25, %v1974_v50  ;;  %v1980_v27 = vrot.slane %v3302_v34, 7  ;;  %v1745_v60 = vrot.slane %v3271_v3, 6 }
 0x1a1   : > { %v3723_v21 = vsel %vm1758_vm9, %v2018_v10, %v2017_v53  ;;  %v1978_v7 = vsel %vm1749_vm6, %v1977_v57, %v1976_v33  ;;  %v1744_v43 = vsel %vm1743_vm4, %v1742_v12, %v3274_v8  ;;  %v1751_v39 = vrot.slane %v3300_v9, 4 }
 0x1a2   : > { %v1979_v40 = vsel %vm1752_vm7, %v3300_v9, %v1978_v7  ;;  %v1747_v31 = vsel %vm1746_vm5, %v1745_v60, %v1744_v43  ;;  %v1860_v16 = vrot.slane %v3274_v8, 2  ;;  %v1861_v26 = vrot.slane %v3276_v56, 1 }
 0x1a3   : > { %v1750_v15 = vsel %vm1749_vm6, %v1748_v32, %v1747_v31  ;;  %v1981_v19 = vsel %vm1755_vm8, %v1980_v27, %v1979_v40  ;;  %v1982_v13 = vrot.slane %v3294_v62, 6  ;;  %v1754_v38 = vrot.slane %v3302_v34, 3 }
 0x1a4   : > { %v1753_v35 = vsel %vm1752_vm7, %v1751_v39, %v1750_v15  ;;  %v1862_v29 = vsel %vm1743_vm4, %v1861_v26, %v1860_v16  ;;  %v1864_v47 = vrot.slane %v3291_v61, 7  ;;  %v1866_v2 = vrot.slane %v3300_v9, 6 }
 0x1a5   : > { %v1983_v8 = vsel %vm1758_vm9, %v1982_v13, %v1981_v19  ;;  %v1756_v55 = vsel %vm1755_vm8, %v1754_v38, %v1753_v35  ;;  %v1863_v4 = vsel %vm1746_vm5, %v3271_v3, %v1862_v29  ;;  %v1757_v54 = vrot.slane %v3294_v62, 2 }
 0x1a6   : > { %v1865_v49 = vsel %vm1749_vm6, %v1864_v47, %v1863_v4  ;;  %v1868_v5 = vrot.slane %v3302_v34, 5  ;;  %v1872_v37 = vrot.slane %v3337_v58, 2  ;;  %v1873_v3 = vrot.slane %v3339_v59, 1 }
 0x1a7   : > { %v1759_v61 = vsel %vm1758_vm9, %v1757_v54, %v1756_v55  ;;  %v1867_v1 = vsel %vm1752_vm7, %v1866_v2, %v1865_v49  ;;  %v1870_v20 = vrot.slane %v3294_v62, 4  ;;  %v1876_v34 = vrot.slane %v3353_v44, 7 }
 0x1a8   : > { %v1869_v9 = vsel %vm1755_vm8, %v1868_v5, %v1867_v1  ;;  %v1874_v22 = vsel %vm1743_vm4, %v1873_v3, %v1872_v37  ;;  %v1760_v0 = vrot.slane %v3339_v59, 7  ;;  %v1878_v51 = vrot.slane %v3380_v6, 6 }
 0x1a9   : > { %v1871_v11 = vsel %vm1758_vm9, %v1870_v20, %v1869_v9  ;;  %v1875_v41 = vsel %vm1746_vm5, %v3328_v42, %v1874_v22  ;;  %v1764_v10 = vrot.slane %v3353_v44, 5  ;;  %v1762_v53 = vrot.slane %v3328_v42, 6 }
 0x1aa   : > { %v1877_v63 = vsel %vm1749_vm6, %v1876_v34, %v1875_v41  ;;  %v1761_v62 = vsel %vm1743_vm4, %v1760_v0, %v3337_v58  ;;  %v1984_v50 = vrot.slane %v3337_v58, 4  ;;  %v1985_v57 = vrot.slane %v3339_v59, 3 }
 0x1ab   : > { %v1880_v25 = vrot.slane %v3382_v14, 5  ;;  %v1879_v12 = vsel %vm1752_vm7, %v1878_v51, %v1877_v63  ;;  %v1763_v33 = vsel %vm1746_vm5, %v1762_v53, %v1761_v62  ;;  %v1766_v7 = vrot.slane %v3380_v6, 4 }
 0x1ac   : > { %v1765_v43 = vsel %vm1749_vm6, %v1764_v10, %v1763_v33  ;;  %v1986_v32 = vsel %vm1743_vm4, %v1985_v57, %v1984_v50  ;;  %v1989_v27 = vrot.slane %v3353_v44, 1  ;;  %v1768_v58 = vrot.slane %v3382_v14, 3 }
 0x1ad   : > { %v1881_v60 = vsel %vm1755_vm8, %v1880_v25, %v1879_v12  ;;  %v1987_v59 = vrot.slane %v3328_v42, 2  ;;  %v1882_v40 = vrot.slane %v3362_v23, 4  ;;  %v1767_v31 = vsel %vm1752_vm7, %v1766_v7, %v1765_v43 }
 0x1ae   : > { %v1769_v19 = vsel %vm1755_vm8, %v1768_v58, %v1767_v31  ;;  %v1770_v42 = vrot.slane %v3362_v23, 2  ;;  %v1992_v13 = vrot.slane %v3382_v14, 7 }
 0x1af   : > { %v1988_v39 = vsel %vm1746_vm5, %v1987_v59, %v1986_v32  ;;  %v1883_v26 = vsel %vm1758_vm9, %v1882_v40, %v1881_v60 }
 0x1b0   : > { %v1990_v15 = vsel %vm1749_vm6, %v1989_v27, %v1988_v39  ;;  %v1771_v29 = vsel %vm1758_vm9, %v1770_v42, %v1769_v19 }
 0x1b1   : > { %v1991_v38 = vsel %vm1752_vm7, %v3380_v6, %v1990_v15 }
 0x1c0   : > { %v2073_v17 = vpop.permute.xlu1 %2072 }
 0x1c1   : > { %v2145_v56 = vsel %vm2136_vm11, %v1983_v8, %v2073_v17  ;;  %v1993_v17 = vsel %vm1755_vm8, %v1992_v13, %v1991_v38  ;;  %v1994_v8 = vrot.slane %v3362_v23, 6 }
 0x1c2   : > { %2151 = vst [vmem:[%s3316_s14 + $0x10] sm:$0x7f] %v2145_v56 }
 0x1c3   : > { %v1995_v56 = vsel %vm1758_vm9, %v1994_v8, %v1993_v17 }
 0x1c5   : > { %v1849_v48 = vpop.permute.xlu0 %1848 }
 0x1c6   : > { %v2137_v18 = vsel %vm2136_vm11, %v1759_v61, %v1849_v48 }
 0x1c7   : > { %2149 = vst [vmem:[%s3316_s14] sm:$0x7f] %v2137_v18 }
 0x1cc   : > { %v1961_v28 = vpop.permute.xlu0 %1960 }
 0x1cd   : > { %v2141_v45 = vsel %vm2136_vm11, %v1871_v11, %v1961_v28 }
 0x1ce   : > { %2150 = vst [vmem:[%s3316_s14 + $0x8] sm:$0x7f] %v2141_v45 }
 0x1d9   : > { %v1963_v16 = vpop.permute.xlu0 %1962 }
 0x1da   : > { %v2142_v44 = vsel %vm2136_vm11, %v1883_v26, %v1963_v16 }
 0x1db   : > { %2155 = vst [vmem:[%s3316_s14 + $0x28] sm:$0x7f] %v2142_v44 }
 0x1dd   : > { %v1851_v35 = vpop.permute.xlu1 %1850 }
 0x1de   : > { %v2138_v47 = vsel %vm2136_vm11, %v1771_v29, %v1851_v35 }
 0x1df   : > { %2154 = vst [vmem:[%s3316_s14 + $0x20] sm:$0x7f] %v2138_v47 }
 0x1e2   : > { %v2075_v55 = vpop.permute.xlu1 %2074 }
 0x1e3   : > { %v2146_v14 = vsel %vm2136_vm11, %v1995_v56, %v2075_v55 }
 0x1e4   : > { %2156 = vst [vmem:[%s3316_s14 + $0x30] sm:$0x7f] %v2146_v14 }
 0x1ef   : > { %v1965_v6 = vpop.permute.xlu1 %1964 }
 0x1f0   : > { %v2143_v4 = vsel %vm2136_vm11, %v3654_v36, %v1965_v6 }
 0x1f1   : > { %2159 = vst [vmem:[%s3316_s14 + $0x48] sm:$0x7f] %v2143_v4 }
 0x1f2   : > { %v1853_v2 = vpop.permute.xlu0 %1852 }
 0x1f3   : > { %v2139_v54 = vsel %vm2136_vm11, %v3668_v46, %v1853_v2 }
 0x1f4   : > { %2158 = vst [vmem:[%s3316_s14 + $0x40] sm:$0x7f] %v2139_v54 }
 0x1f8   : > { %v2077_v23 = vpop.permute.xlu0 %2076 }
 0x1f9   : > { %v2147_v49 = vsel %vm2136_vm11, %v3684_v24, %v2077_v23 }
 0x1fa   : > { %2160 = vst [vmem:[%s3316_s14 + $0x50] sm:$0x7f] %v2147_v49 }
 0x1fe   : > { %v1967_v48 = vpop.permute.xlu0 %1966 }
 0x1ff   : > { %v2144_v61 = vsel %vm2136_vm11, %v3699_v52, %v1967_v48  ;;  %v1855_v5 = vpop.permute.xlu1 %1854 }
 0x200   : > { %2163 = vst [vmem:[%s3316_s14 + $0x68] sm:$0x7f] %v2144_v61  ;;  %v2140_v36 = vsel %vm2136_vm11, %v3713_v30, %v1855_v5 }
 0x201   : > { %2162 = vst [vmem:[%s3316_s14 + $0x60] sm:$0x7f] %v2140_v36 }
 0x203   : > { %v2079_v18 = vpop.permute.xlu1 %2078 }
 0x204   : > { %v2148_v46 = vsel %vm2136_vm11, %v3723_v21, %v2079_v18 }
 0x205   : > { %2164 = vst [vmem:[%s3316_s14 + $0x70] sm:$0x7f] %v2148_v46 }
 0x206 PF: > { %s13_s12 = sadd.s32 1, %s2758_s12  }
 0x207   : > { %p10_p4 = scmp.ge.s32.totalorder %s13_s12, 4  }
 0x209   :  { %12 = sbr.rel (!%p10_p4) target bundleno = 1 (0x1), region = 65 }

</bundles_post_ra>
